<compile_context>
chip_gen: v5e
topology: v5e:2x2
jax: 0.10.0
libtpu: 0.0.40
codegen_flags: <defaults>
</compile_context>

<pallas_src>
import math

import numpy as np

import jax
import jax.numpy as jnp
from jax.experimental import pallas as pl
from jax.experimental.pallas import tpu as pltpu


# ---------------------------------------------------------------------------
# Kernel 1: torch-style LayerNorm   y = a * (x - mean) / (std_unbiased + eps) + b
# ---------------------------------------------------------------------------
def _layernorm_kernel(x_ref, a_ref, b_ref, o_ref):
    x = x_ref[...]
    d = x.shape[-1]
    mean = jnp.mean(x, axis=-1, keepdims=True)
    xc = x - mean
    var = jnp.sum(xc * xc, axis=-1, keepdims=True) * (1.0 / (d - 1))  # unbiased, like torch.std
    # Per-row reciprocal (only tm of them) instead of tm*d broadcast divides.
    # approx=False keeps the 1e-4 tolerance against the reference.
    inv = pl.reciprocal(jnp.sqrt(var) + 1e-6, approx=False)
    o_ref[...] = (a_ref[...] * xc * inv + b_ref[...]).astype(o_ref.dtype)


def _pick_row_tile(n, d, target_bytes=2 << 20):
    """Largest row tile (multiple of 8, <= 4096 rows) fitting ~target_bytes."""
    rows = max(8, min(4096, ((target_bytes // (4 * d)) // 8) * 8))
    return n if n <= rows else rows


def pallas_layernorm(x2d, a, b):
    n, d = x2d.shape
    tm = _pick_row_tile(n, d)
    grid = (pl.cdiv(n, tm),)   # partial tail block is safe: LN is row-independent
    cost = pl.CostEstimate(
        flops=int(8 * n * d),
        transcendentals=int(2 * n),
        bytes_accessed=int(4 * (2 * n * d + 2 * d)),
    )
    return pl.pallas_call(
        _layernorm_kernel,
        out_shape=jax.ShapeDtypeStruct((n, d), x2d.dtype),
        grid_spec=pltpu.PrefetchScalarGridSpec(
            num_scalar_prefetch=0,
            grid=grid,
            in_specs=[
                pl.BlockSpec((tm, d), lambda i: (i, 0)),   # token tile (pipelined)
                pl.BlockSpec((1, d), lambda i: (0, 0)),    # scale  (VMEM-resident)
                pl.BlockSpec((1, d), lambda i: (0, 0)),    # shift  (VMEM-resident)
            ],
            out_specs=pl.BlockSpec((tm, d), lambda i: (i, 0)),
        ),
        compiler_params=pltpu.CompilerParams(dimension_semantics=("parallel",)),
        cost_estimate=cost,
    )(x2d, a.reshape(1, d), b.reshape(1, d))


# ---------------------------------------------------------------------------
# Kernel 2: fused, group-batched scores
#   For each group g and each (k, r) pair (flattened kr = k*L + r):
#     mean3[g, kr, :] = mean(ctx[g, k..r, :])   (0 when k > r, exactly)
#     rep3 [g, kr, :] = ctx[g, r, :]            (== torch repeat)
#     rep3            = where(mean3 == 0, 0, rep3)       (masked_fill)
#     score[g, kr]    = sigmoid(sum_c rep3*w_ctx + mean3*w_mean + bias)
#   Running means / selection are built with L broadcast-MACs on the VPU
#   (L is tiny, so a K=L MXU contraction would be almost pure overhead).
# ---------------------------------------------------------------------------
def _group_scores_kernel(ctx_ref, w3m_ref, sel3_ref, wab_ref, bias_ref, o_ref):
    tg, l, d = ctx_ref.shape
    ctx = ctx_ref[...]                            # (TG, L, d)
    w3m = w3m_ref[...]                            # (L, L*L) running-mean weights
    sel3 = sel3_ref[...]                          # (L, L*L) torch-`repeat` row selection

    def term(m):
        row = ctx[:, m:m + 1, :]                                  # (TG, 1, d)
        return (row * w3m[m:m + 1, :][:, :, None],                # (TG, L*L, d)
                row * sel3[m:m + 1, :][:, :, None])

    mean3, rep3 = term(0)
    for m in range(1, l):                         # static, unrolled (L is small)
        dm, dr = term(m)
        mean3 = mean3 + dm
        rep3 = rep3 + dr

    rep3 = jnp.where(mean3 == 0.0, 0.0, rep3)     # torch masked_fill(mean == 0, 0)

    wc = wab_ref[0:1, :][:, None, :]              # (1, 1, d)
    wm = wab_ref[1:2, :][:, None, :]              # (1, 1, d)
    pre = jnp.sum(rep3 * wc + mean3 * wm, axis=-1) + bias_ref[0, 0]   # (TG, L*L)
    o_ref[...] = jax.nn.sigmoid(pre).astype(o_ref.dtype)


def _pick_group_tile(g):
    if g <= 8:
        return g
    # >= 2 grid steps so v7x's two TensorCores both get work; blocks stay tiny.
    return max(8, min(256, (g + 1) // 2))


def pallas_group_scores(ctx_all, w3m, sel3, wab, bias):
    g, l, d = ctx_all.shape
    ll = l * l
    tg = _pick_group_tile(g)
    grid = (pl.cdiv(g, tg),)   # partial tail block is safe: groups are independent
    cost = pl.CostEstimate(
        flops=int(g * (4 * l + 6) * ll * d),
        transcendentals=int(g * ll),
        bytes_accessed=int(4 * (g * l * d + 2 * l * ll + 2 * d + 1 + g * ll)),
    )
    return pl.pallas_call(
        _group_scores_kernel,
        out_shape=jax.ShapeDtypeStruct((g, ll), jnp.float32),
        grid_spec=pltpu.PrefetchScalarGridSpec(
            num_scalar_prefetch=0,
            grid=grid,
            in_specs=[
                pl.BlockSpec((tg, l, d), lambda i: (i, 0, 0)),        # group tile (pipelined)
                pl.BlockSpec((l, ll), lambda i: (0, 0)),              # resident
                pl.BlockSpec((l, ll), lambda i: (0, 0)),              # resident
                pl.BlockSpec((2, d), lambda i: (0, 0)),               # resident fc weights
                pl.BlockSpec(memory_space=pltpu.MemorySpace.SMEM),    # fc bias scalar
            ],
            out_specs=pl.BlockSpec((tg, ll), lambda i: (i, 0)),
        ),
        compiler_params=pltpu.CompilerParams(dimension_semantics=("parallel",)),
        cost_estimate=cost,
    )(ctx_all, w3m, sel3, wab, bias)


def _span_weight_and_select(l):
    """W3m[m, k*L+r] = 1/(r-k+1) if k<=m<=r else 0 ; SEL3[m, k*L+r] = (m == r)."""
    m = np.arange(l)[:, None, None]
    k = np.arange(l)[None, :, None]
    r = np.arange(l)[None, None, :]
    valid = (k <= m) & (m <= r)
    w3 = np.where(valid, 1.0 / np.maximum(r - k + 1, 1), 0.0).astype(np.float32)
    sel = np.broadcast_to(m == r, (l, l, l)).astype(np.float32)
    return jnp.asarray(w3.reshape(l, l * l)), jnp.asarray(sel.reshape(l, l * l))


# ---------------------------------------------------------------------------
# XLA layout plumbing shared by the Pallas path and the pure-jnp reference
# ---------------------------------------------------------------------------
def _meanpool_and_views(xn, b, s, l, d):
    # torch meanpool(): raw (memory-order) reshape, 2x2 average pool, raw reshape back.
    flat = xn.reshape(b, d, s, s)
    pooled = flat.reshape(b, d, l, 2, l, 2).mean(axis=(3, 5))
    ctx = pooled.reshape(b, l * l, d)
    ctx_i = ctx.reshape(b * l, l, d)                                              # row groups
    ctx_x = jnp.transpose(ctx.reshape(b, l, l, d), (0, 2, 1, 3)).reshape(b * l, l, d)  # convert_col
    return ctx_i, ctx_x


def _assemble_outputs(mij_raw, mxy_raw, prior_ij, prior_xy, hier_add_index, seq_len2):
    l = mij_raw.shape[-1]
    eye = jnp.eye(l, dtype=mij_raw.dtype)

    mij = mij_raw
    if hier_add_index:
        mij = prior_ij + (1.0 - prior_ij) * mij
    gij = jnp.where(jnp.triu(mij) == 0, 1.0, mij)
    gij = jnp.cumprod(gij, axis=2)
    gij = jnp.triu(gij)
    gij = gij + jnp.swapaxes(gij, 1, 2)
    dij = jnp.diagonal(gij, axis1=-2, axis2=-1) - 1.0
    gij = gij - dij[..., None] * eye

    mxy = jnp.triu(mxy_raw)
    if hier_add_index:
        mxy = prior_xy + (1.0 - prior_xy) * mxy
    gxy = jnp.where(mxy == 0, 1.0, mxy)
    gxy = jnp.cumprod(gxy, axis=2)
    gxy = jnp.triu(gxy)
    gxy = gxy + jnp.swapaxes(gxy, 1, 2)
    dxy = jnp.diagonal(gxy, axis1=-2, axis2=-1) - 1.0
    gxy = gxy - dxy[..., None] * eye

    # Mijxy[b,p,q,r,s] = Gij[b,r,p,q] * Gxy[b,p,r,s]
    mijxy = jnp.transpose(gij, (0, 2, 3, 1))[..., None] * gxy[:, :, None, :, :]
    up = jnp.repeat(jnp.repeat(jnp.repeat(mijxy, 2, axis=2), 2, axis=3), 2, axis=4)
    up = jnp.concatenate([up, up], axis=1)
    mijxy_l = up.reshape(-1, seq_len2, seq_len2)
    return mijxy_l, mij, mxy


# ---------------------------------------------------------------------------
# Full forward (Pallas kernels for LayerNorm + group scores, XLA glue otherwise)
# ---------------------------------------------------------------------------
def group_attention_two_dim_fc_forward(context, mask, prior_ij, prior_xy, params,
                                       hier_add_index=1):
    del mask  # present in the torch signature but never used in forward()
    b, seq_len2, d = context.shape
    s = int(round(math.sqrt(seq_len2)))
    l = s // 2

    # 1) LayerNorm (Pallas kernel, large row tiles, params resident)
    xn = pallas_layernorm(context.reshape(b * seq_len2, d), params["ln_a"], params["ln_b"])
    xn = xn.reshape(b, seq_len2, d)

    # 2) meanpool + row/column views (pure layout plumbing on tiny tensors)
    ctx_i, ctx_x = _meanpool_and_views(xn, b, s, l, d)
    ctx_all = jnp.concatenate([ctx_i, ctx_x], axis=0)          # (2*B*L, L, d)

    # 3) fused running-mean / mask / fc / sigmoid scores (Pallas, group-batched grid)
    w3m, sel3 = _span_weight_and_select(l)
    fc_w = params["fc_w"]
    wab = jnp.stack([fc_w[:d], fc_w[d:]], axis=0)              # (2, d): [w_ctx; w_mean]
    bias = params["fc_b"].reshape(1, 1)
    scores = pallas_group_scores(ctx_all, w3m, sel3, wab, bias)  # (2*B*L, L*L)
    scores = scores.reshape(2, b, l, l, l)
    mij_raw, mxy_raw = scores[0], scores[1]

    # 4) priors + cumprod gating + outer combine + nearest 2x upsample (tiny tensors).
    return _assemble_outputs(mij_raw, mxy_raw, prior_ij, prior_xy, hier_add_index, seq_len2)


# ---------------------------------------------------------------------------
# Pure-jnp reference: literal translation of the torch module
# ---------------------------------------------------------------------------
def _reference_forward(context, prior_ij, prior_xy, params, hier_add_index=1):
    b, seq_len2, d = context.shape
    s = int(round(math.sqrt(seq_len2)))
    l = s // 2

    mean = jnp.mean(context, axis=-1, keepdims=True)
    std = jnp.std(context, axis=-1, keepdims=True, ddof=1)
    xn = params["ln_a"] * (context - mean) / (std + 1e-6) + params["ln_b"]

    ctx_i, ctx_x = _meanpool_and_views(xn, b, s, l, d)

    mm = np.zeros((l, l, l), np.float32)          # mean_matrix_all
    for i in range(l):
        ln = l - i
        a = np.triu(np.ones((ln, ln), np.float32))
        bb = np.arange(1, ln + 1, dtype=np.float32)
        mm[i, i:, i:] = a / bb
    mean_mask = jnp.asarray(mm)

    fc_w, fc_b = params["fc_w"], params["fc_b"]

    def branch(ctx_b):
        c1 = jnp.tile(ctx_b, (1, l, 1)).reshape(-1, l, d)
        c2 = jnp.swapaxes(c1, 1, 2).reshape(-1, d, l)
        mmb = jnp.tile(mean_mask, (b * l, 1, 1))
        cmean = jnp.swapaxes(jnp.matmul(c2, mmb).reshape(-1, d, l), 1, 2)
        c1m = jnp.where(cmean == 0, 0.0, c1)
        inp = jnp.concatenate([c1m, cmean], axis=2).reshape(-1, 2 * d)
        return jax.nn.sigmoid(jnp.dot(inp, fc_w) + fc_b[0]).reshape(b, l, l, l)

    return _assemble_outputs(branch(ctx_i), branch(ctx_x),
                             prior_ij, prior_xy, hier_add_index, seq_len2)


if __name__ == "__main__":
    key = jax.random.PRNGKey(0)
    batch, s_side, d_model = 2, 8, 32            # seq_len2 = 64, pooled side L = 4
    seq_len2 = s_side * s_side
    l_side = s_side // 2

    keys = jax.random.split(key, 7)
    context = jax.random.normal(keys[0], (batch, seq_len2, d_model), jnp.float32)
    mask = jnp.ones((batch, seq_len2, seq_len2), jnp.float32)       # unused by forward()
    prior_ij = jax.random.uniform(keys[1], (batch, l_side, l_side, l_side), jnp.float32)
    prior_xy = jax.random.uniform(keys[2], (batch, l_side, l_side, l_side), jnp.float32)

    lim = 1.0 / math.sqrt(2 * d_model)
    params = {
        "ln_a": 1.0 + 0.1 * jax.random.normal(keys[3], (d_model,), jnp.float32),
        "ln_b": 0.1 * jax.random.normal(keys[4], (d_model,), jnp.float32),
        "fc_w": jax.random.uniform(keys[5], (2 * d_model,), jnp.float32, minval=-lim, maxval=lim),
        "fc_b": jax.random.uniform(keys[6], (1,), jnp.float32, minval=-lim, maxval=lim),
    }

    fwd = jax.jit(group_attention_two_dim_fc_forward, static_argnames=("hier_add_index",))
    mijxy_l, mij, mxy = fwd(context, mask, prior_ij, prior_xy, params, hier_add_index=1)
    jax.block_until_ready((mijxy_l, mij, mxy))

    ref_mijxy_l, ref_mij, ref_mxy = _reference_forward(
        context, prior_ij, prior_xy, params, hier_add_index=1)

    assert mijxy_l.shape == (batch, seq_len2, seq_len2)
    assert mij.shape == (batch, l_side, l_side, l_side)
    assert mxy.shape == (batch, l_side, l_side, l_side)
    for got, want in ((mijxy_l, ref_mijxy_l), (mij, ref_mij), (mxy, ref_mxy)):
        err = float(jnp.max(jnp.abs(got - want)))
        assert jnp.allclose(got, want, atol=1e-4, rtol=1e-3), f"mismatch vs reference: {err}"

    print("KERNEL_OK")
</pallas_src>

<mosaic_0001>
module attributes {stable_mosaic.version = 11 : i64} {
  func.func @_layernorm_kernel(%arg0: i32, %arg1: memref<128x32xf32, #tpu.memory_space<vmem>>, %arg2: memref<1x32xf32, #tpu.memory_space<vmem>>, %arg3: memref<1x32xf32, #tpu.memory_space<vmem>>, %arg4: memref<128x32xf32, #tpu.memory_space<vmem>>) attributes {dimension_semantics = [#tpu.dimension_semantics<parallel>], iteration_bounds = array<i64: 1>, scalar_prefetch = 0 : i64, scratch_operands = 0 : i64, tpu.core_type = #tpu.core_type<tc>, window_params = [{transform_indices = @transform_0, window_bounds = array<i64: 128, 32>}, {pipeline_mode = #tpu.pipeline_mode<synchronous>, transform_indices = @transform_1, window_bounds = array<i64: 1, 32>}, {pipeline_mode = #tpu.pipeline_mode<synchronous>, transform_indices = @transform_2, window_bounds = array<i64: 1, 32>}, {transform_indices = @transform_3, window_bounds = array<i64: 128, 32>}]} {
    %c0 = arith.constant 0 : index
    %c0_0 = arith.constant 0 : index
    %0 = vector.load %arg1[%c0, %c0_0] : memref<128x32xf32, #tpu.memory_space<vmem>>, vector<128x32xf32>
    %cst = arith.constant dense<0.000000e+00> : vector<128xf32>
    %1 = vector.multi_reduction <add>, %0, %cst [1] : vector<128x32xf32> to vector<128xf32>
    %2 = vector.shape_cast %1 : vector<128xf32> to vector<128x1xf32>
    %cst_1 = arith.constant 3.200000e+01 : f32
    %3 = vector.broadcast %cst_1 : f32 to vector<128x1xf32>
    %4 = arith.divf %2, %3 : vector<128x1xf32>
    %5 = vector.broadcast %4 : vector<128x1xf32> to vector<128x32xf32>
    %6 = arith.subf %0, %5 : vector<128x32xf32>
    %7 = arith.mulf %6, %6 : vector<128x32xf32>
    %cst_2 = arith.constant dense<0.000000e+00> : vector<128xf32>
    %8 = vector.multi_reduction <add>, %7, %cst_2 [1] : vector<128x32xf32> to vector<128xf32>
    %9 = vector.shape_cast %8 : vector<128xf32> to vector<128x1xf32>
    %cst_3 = arith.constant 0.0322580636 : f32
    %10 = vector.broadcast %cst_3 : f32 to vector<128x1xf32>
    %11 = arith.mulf %9, %10 : vector<128x1xf32>
    %12 = math.sqrt %11 : vector<128x1xf32>
    %cst_4 = arith.constant 9.99999997E-7 : f32
    %13 = vector.broadcast %cst_4 : f32 to vector<128x1xf32>
    %14 = arith.addf %12, %13 : vector<128x1xf32>
    %15 = tpu.reciprocal %14 : vector<128x1xf32> -> vector<128x1xf32>
    %c0_5 = arith.constant 0 : index
    %c0_6 = arith.constant 0 : index
    %16 = vector.load %arg2[%c0_5, %c0_6] : memref<1x32xf32, #tpu.memory_space<vmem>>, vector<1x32xf32>
    %17 = vector.broadcast %16 : vector<1x32xf32> to vector<128x32xf32>
    %18 = arith.mulf %17, %6 : vector<128x32xf32>
    %19 = vector.broadcast %15 : vector<128x1xf32> to vector<128x32xf32>
    %20 = arith.mulf %18, %19 : vector<128x32xf32>
    %c0_7 = arith.constant 0 : index
    %c0_8 = arith.constant 0 : index
    %21 = vector.load %arg3[%c0_7, %c0_8] : memref<1x32xf32, #tpu.memory_space<vmem>>, vector<1x32xf32>
    %22 = vector.broadcast %21 : vector<1x32xf32> to vector<128x32xf32>
    %23 = arith.addf %20, %22 : vector<128x32xf32>
    %c0_9 = arith.constant 0 : index
    %c0_10 = arith.constant 0 : index
    %24 = vector.load %arg4[%c0_9, %c0_10] : memref<128x32xf32, #tpu.memory_space<vmem>>, vector<128x32xf32>
    tpu.vector_store %arg4[%c0_9, %c0_10], %23 {strides = array<i32>} : memref<128x32xf32, #tpu.memory_space<vmem>>, vector<128x32xf32>,
    return
  }
  func.func @transform_0(%arg0: i32) -> (i32, i32) {
    %c0_i32 = arith.constant 0 : i32
    %c0_i32_0 = arith.constant 0 : i32
    return %arg0, %c0_i32 : i32, i32
  }
  func.func @transform_1(%arg0: i32) -> (i32, i32) {
    %c0_i32 = arith.constant 0 : i32
    %c0_i32_0 = arith.constant 0 : i32
    %c0_i32_1 = arith.constant 0 : i32
    return %c0_i32, %c0_i32_0 : i32, i32
  }
  func.func @transform_2(%arg0: i32) -> (i32, i32) {
    %c0_i32 = arith.constant 0 : i32
    %c0_i32_0 = arith.constant 0 : i32
    %c0_i32_1 = arith.constant 0 : i32
    return %c0_i32, %c0_i32_0 : i32, i32
  }
  func.func @transform_3(%arg0: i32) -> (i32, i32) {
    %c0_i32 = arith.constant 0 : i32
    %c0_i32_0 = arith.constant 0 : i32
    return %arg0, %c0_i32 : i32, i32
  }
}

module attributes {stable_mosaic.version = 11 : i64} {
  func.func @_group_scores_kernel(%arg0: i32, %arg1: memref<8x4x32xf32, #tpu.memory_space<vmem>>, %arg2: memref<4x16xf32, #tpu.memory_space<vmem>>, %arg3: memref<4x16xf32, #tpu.memory_space<vmem>>, %arg4: memref<2x32xf32, #tpu.memory_space<vmem>>, %arg5: memref<1x1xf32, #tpu.memory_space<smem>>, %arg6: memref<8x16xf32, #tpu.memory_space<vmem>>) attributes {dimension_semantics = [#tpu.dimension_semantics<parallel>], iteration_bounds = array<i64: 2>, scalar_prefetch = 0 : i64, scratch_operands = 0 : i64, tpu.core_type = #tpu.core_type<tc>, window_params = [{transform_indices = @transform_0, window_bounds = array<i64: 8, 4, 32>}, {pipeline_mode = #tpu.pipeline_mode<synchronous>, transform_indices = @transform_1, window_bounds = array<i64: 4, 16>}, {pipeline_mode = #tpu.pipeline_mode<synchronous>, transform_indices = @transform_2, window_bounds = array<i64: 4, 16>}, {pipeline_mode = #tpu.pipeline_mode<synchronous>, transform_indices = @transform_3, window_bounds = array<i64: 2, 32>}, {transform_indices = @transform_4, window_bounds = array<i64: 1, 1>}, {transform_indices = @transform_5, window_bounds = array<i64: 8, 16>}]} {
    %c0 = arith.constant 0 : index
    %c0_0 = arith.constant 0 : index
    %c0_1 = arith.constant 0 : index
    %0 = vector.load %arg1[%c0, %c0_0, %c0_1] : memref<8x4x32xf32, #tpu.memory_space<vmem>>, vector<8x4x32xf32>
    %c0_2 = arith.constant 0 : index
    %c0_3 = arith.constant 0 : index
    %1 = vector.load %arg2[%c0_2, %c0_3] : memref<4x16xf32, #tpu.memory_space<vmem>>, vector<4x16xf32>
    %c0_4 = arith.constant 0 : index
    %c0_5 = arith.constant 0 : index
    %2 = vector.load %arg3[%c0_4, %c0_5] : memref<4x16xf32, #tpu.memory_space<vmem>>, vector<4x16xf32>
    %3 = vector.extract_strided_slice %0 {offsets = [0, 0, 0], sizes = [8, 1, 32], strides = [1, 1, 1]} : vector<8x4x32xf32> to vector<8x1x32xf32>
    %4 = vector.extract_strided_slice %1 {offsets = [0, 0], sizes = [1, 16], strides = [1, 1]} : vector<4x16xf32> to vector<1x16xf32>
    %5 = vector.shape_cast %4 : vector<1x16xf32> to vector<1x16x1xf32>
    %6 = vector.broadcast %3 : vector<8x1x32xf32> to vector<8x16x32xf32>
    %7 = vector.broadcast %5 : vector<1x16x1xf32> to vector<8x16x32xf32>
    %8 = arith.mulf %6, %7 : vector<8x16x32xf32>
    %9 = vector.extract_strided_slice %2 {offsets = [0, 0], sizes = [1, 16], strides = [1, 1]} : vector<4x16xf32> to vector<1x16xf32>
    %10 = vector.shape_cast %9 : vector<1x16xf32> to vector<1x16x1xf32>
    %11 = vector.broadcast %3 : vector<8x1x32xf32> to vector<8x16x32xf32>
    %12 = vector.broadcast %10 : vector<1x16x1xf32> to vector<8x16x32xf32>
    %13 = arith.mulf %11, %12 : vector<8x16x32xf32>
    %14 = vector.extract_strided_slice %0 {offsets = [0, 1, 0], sizes = [8, 1, 32], strides = [1, 1, 1]} : vector<8x4x32xf32> to vector<8x1x32xf32>
    %15 = vector.extract_strided_slice %1 {offsets = [1, 0], sizes = [1, 16], strides = [1, 1]} : vector<4x16xf32> to vector<1x16xf32>
    %16 = vector.shape_cast %15 : vector<1x16xf32> to vector<1x16x1xf32>
    %17 = vector.broadcast %14 : vector<8x1x32xf32> to vector<8x16x32xf32>
    %18 = vector.broadcast %16 : vector<1x16x1xf32> to vector<8x16x32xf32>
    %19 = arith.mulf %17, %18 : vector<8x16x32xf32>
    %20 = vector.extract_strided_slice %2 {offsets = [1, 0], sizes = [1, 16], strides = [1, 1]} : vector<4x16xf32> to vector<1x16xf32>
    %21 = vector.shape_cast %20 : vector<1x16xf32> to vector<1x16x1xf32>
    %22 = vector.broadcast %14 : vector<8x1x32xf32> to vector<8x16x32xf32>
    %23 = vector.broadcast %21 : vector<1x16x1xf32> to vector<8x16x32xf32>
    %24 = arith.mulf %22, %23 : vector<8x16x32xf32>
    %25 = arith.addf %8, %19 : vector<8x16x32xf32>
    %26 = arith.addf %13, %24 : vector<8x16x32xf32>
    %27 = vector.extract_strided_slice %0 {offsets = [0, 2, 0], sizes = [8, 1, 32], strides = [1, 1, 1]} : vector<8x4x32xf32> to vector<8x1x32xf32>
    %28 = vector.extract_strided_slice %1 {offsets = [2, 0], sizes = [1, 16], strides = [1, 1]} : vector<4x16xf32> to vector<1x16xf32>
    %29 = vector.shape_cast %28 : vector<1x16xf32> to vector<1x16x1xf32>
    %30 = vector.broadcast %27 : vector<8x1x32xf32> to vector<8x16x32xf32>
    %31 = vector.broadcast %29 : vector<1x16x1xf32> to vector<8x16x32xf32>
    %32 = arith.mulf %30, %31 : vector<8x16x32xf32>
    %33 = vector.extract_strided_slice %2 {offsets = [2, 0], sizes = [1, 16], strides = [1, 1]} : vector<4x16xf32> to vector<1x16xf32>
    %34 = vector.shape_cast %33 : vector<1x16xf32> to vector<1x16x1xf32>
    %35 = vector.broadcast %27 : vector<8x1x32xf32> to vector<8x16x32xf32>
    %36 = vector.broadcast %34 : vector<1x16x1xf32> to vector<8x16x32xf32>
    %37 = arith.mulf %35, %36 : vector<8x16x32xf32>
    %38 = arith.addf %25, %32 : vector<8x16x32xf32>
    %39 = arith.addf %26, %37 : vector<8x16x32xf32>
    %40 = vector.extract_strided_slice %0 {offsets = [0, 3, 0], sizes = [8, 1, 32], strides = [1, 1, 1]} : vector<8x4x32xf32> to vector<8x1x32xf32>
    %41 = vector.extract_strided_slice %1 {offsets = [3, 0], sizes = [1, 16], strides = [1, 1]} : vector<4x16xf32> to vector<1x16xf32>
    %42 = vector.shape_cast %41 : vector<1x16xf32> to vector<1x16x1xf32>
    %43 = vector.broadcast %40 : vector<8x1x32xf32> to vector<8x16x32xf32>
    %44 = vector.broadcast %42 : vector<1x16x1xf32> to vector<8x16x32xf32>
    %45 = arith.mulf %43, %44 : vector<8x16x32xf32>
    %46 = vector.extract_strided_slice %2 {offsets = [3, 0], sizes = [1, 16], strides = [1, 1]} : vector<4x16xf32> to vector<1x16xf32>
    %47 = vector.shape_cast %46 : vector<1x16xf32> to vector<1x16x1xf32>
    %48 = vector.broadcast %40 : vector<8x1x32xf32> to vector<8x16x32xf32>
    %49 = vector.broadcast %47 : vector<1x16x1xf32> to vector<8x16x32xf32>
    %50 = arith.mulf %48, %49 : vector<8x16x32xf32>
    %51 = arith.addf %38, %45 : vector<8x16x32xf32>
    %52 = arith.addf %39, %50 : vector<8x16x32xf32>
    %cst = arith.constant 0.000000e+00 : f32
    %53 = vector.broadcast %cst : f32 to vector<8x16x32xf32>
    %54 = arith.cmpf oeq, %51, %53 : vector<8x16x32xf32>
    %cst_6 = arith.constant 0.000000e+00 : f32
    %55 = vector.broadcast %cst_6 : f32 to vector<8x16x32xf32>
    %56 = arith.select %54, %55, %52 : vector<8x16x32xi1>, vector<8x16x32xf32>
    %c0_7 = arith.constant 0 : index
    %c0_8 = arith.constant 0 : index
    %57 = vector.load %arg4[%c0_7, %c0_8] : memref<2x32xf32, #tpu.memory_space<vmem>>, vector<1x32xf32>
    %58 = vector.shape_cast %57 : vector<1x32xf32> to vector<1x1x32xf32>
    %c1 = arith.constant 1 : index
    %c0_9 = arith.constant 0 : index
    %59 = vector.load %arg4[%c1, %c0_9] : memref<2x32xf32, #tpu.memory_space<vmem>>, vector<1x32xf32>
    %60 = vector.shape_cast %59 : vector<1x32xf32> to vector<1x1x32xf32>
    %61 = vector.broadcast %58 : vector<1x1x32xf32> to vector<8x16x32xf32>
    %62 = arith.mulf %56, %61 : vector<8x16x32xf32>
    %63 = vector.broadcast %60 : vector<1x1x32xf32> to vector<8x16x32xf32>
    %64 = arith.mulf %51, %63 : vector<8x16x32xf32>
    %65 = arith.addf %62, %64 : vector<8x16x32xf32>
    %cst_10 = arith.constant dense<0.000000e+00> : vector<8x16xf32>
    %66 = vector.multi_reduction <add>, %65, %cst_10 [2] : vector<8x16x32xf32> to vector<8x16xf32>
    %c0_11 = arith.constant 0 : index
    %c0_12 = arith.constant 0 : index
    %67 = memref.load %arg5[%c0_11, %c0_12] : memref<1x1xf32, #tpu.memory_space<smem>>
    %68 = vector.broadcast %67 : f32 to vector<8x16xf32>
    %69 = arith.addf %66, %68 : vector<8x16xf32>
    %70 = arith.negf %69 : vector<8x16xf32>
    %71 = math.exp %70 : vector<8x16xf32>
    %cst_13 = arith.constant 1.000000e+00 : f32
    %72 = vector.broadcast %cst_13 : f32 to vector<8x16xf32>
    %73 = arith.addf %72, %71 : vector<8x16xf32>
    %74 = arith.divf %72, %73 : vector<8x16xf32>
    %c0_14 = arith.constant 0 : index
    %c0_15 = arith.constant 0 : index
    %75 = vector.load %arg6[%c0_14, %c0_15] : memref<8x16xf32, #tpu.memory_space<vmem>>, vector<8x16xf32>
    tpu.vector_store %arg6[%c0_14, %c0_15], %74 {strides = array<i32>} : memref<8x16xf32, #tpu.memory_space<vmem>>, vector<8x16xf32>,
    return
  }
  func.func @transform_0(%arg0: i32) -> (i32, i32, i32) {
    %c0_i32 = arith.constant 0 : i32
    %c0_i32_0 = arith.constant 0 : i32
    %c0_i32_1 = arith.constant 0 : i32
    return %arg0, %c0_i32, %c0_i32_0 : i32, i32, i32
  }
  func.func @transform_1(%arg0: i32) -> (i32, i32) {
    %c0_i32 = arith.constant 0 : i32
    %c0_i32_0 = arith.constant 0 : i32
    %c0_i32_1 = arith.constant 0 : i32
    return %c0_i32, %c0_i32_0 : i32, i32
  }
  func.func @transform_2(%arg0: i32) -> (i32, i32) {
    %c0_i32 = arith.constant 0 : i32
    %c0_i32_0 = arith.constant 0 : i32
    %c0_i32_1 = arith.constant 0 : i32
    return %c0_i32, %c0_i32_0 : i32, i32
  }
  func.func @transform_3(%arg0: i32) -> (i32, i32) {
    %c0_i32 = arith.constant 0 : i32
    %c0_i32_0 = arith.constant 0 : i32
    %c0_i32_1 = arith.constant 0 : i32
    return %c0_i32, %c0_i32_0 : i32, i32
  }
  func.func @transform_4(%arg0: i32) -> (i32, i32) {
    %c0_i32 = arith.constant 0 : i32
    %c0_i32_0 = arith.constant 0 : i32
    %c0_i32_1 = arith.constant 0 : i32
    return %c0_i32, %c0_i32_0 : i32, i32
  }
  func.func @transform_5(%arg0: i32) -> (i32, i32) {
    %c0_i32 = arith.constant 0 : i32
    %c0_i32_0 = arith.constant 0 : i32
    return %arg0, %c0_i32 : i32, i32
  }
}

</mosaic_0001>

<bundles_post_ra>
// kernel: group_attention_two_dim_fc_forward.2
= control target key start
LH: loop header
LB: loop body
LE: loop exit
PB: predicated region body
PF: predicated region fallthrough
CT: control target
= control target key end

     0   :  { %vm30_vm0 = vcmask 261120   ;;  %v775_v32 = vmov 32.0   ;;  %s1448_s0 = inlined_call_operand.vmem [shape: f32[128,32], index: 0, kind: input, shape index: {}]   ;;  %s1449_s1 = inlined_call_operand.vmem [shape: f32[1,32], index: 1, kind: input, shape index: {}]   ;;  %s1450_s2 = inlined_call_operand.vmem [shape: f32[1,32], index: 2, kind: input, shape index: {}]   ;;  %s1451_s3 = inlined_call_operand.vmem [shape: f32[128,32], index: 3, kind: output, shape index: {}]  }
   0x1   :  { %v799_v0 = vld [vmem:[%s1448_s0 + $0x20] sm:$0xff]  ;;  %v804_v1 = vld [vmem:[%s1448_s0 + $0x10] sm:$0xff]  ;;  %v820_v6 = vld [vmem:[%s1448_s0 + $0x28] sm:$0xff]  ;;  %709 = vrcp.f32 %v775_v32 }
   0x2   :  { %v809_v2 = vld [vmem:[%s1448_s0] sm:$0xff]  ;;  %v43_v3 = vsel %vm30_vm0, %v799_v0, 0.0  ;;  %v37_v4 = vsel %vm30_vm0, %v804_v1, 0.0  ;;  %v825_v7 = vld [vmem:[%s1448_s0 + $0x18] sm:$0xff]  ;;  %v830_v8 = vld [vmem:[%s1448_s0 + $0x8] sm:$0xff]  ;;  %v46_v9 = vsel %vm30_vm0, %v820_v6, 0.0 }
   0x3   :  { %v31_v5 = vsel %vm30_vm0, %v809_v2, 0.0  ;;  %44 = vadd.xlane.f32.xlu2 %v43_v3  ;;  %38 = vadd.xlane.f32.xlu1 %v37_v4  ;;  %v40_v10 = vsel %vm30_vm0, %v825_v7, 0.0  ;;  %v34_v11 = vsel %vm30_vm0, %v830_v8, 0.0  ;;  %v841_v12 = vld [vmem:[%s1448_s0 + $0x40] sm:$0xff]  ;;  %v846_v13 = vld [vmem:[%s1448_s0 + $0x38] sm:$0xff]  ;;  %v851_v14 = vld [vmem:[%s1448_s0 + $0x30] sm:$0xff] }
   0x4   :  { %32 = vadd.xlane.f32.xlu0 %v31_v5  ;;  %v55_v15 = vsel %vm30_vm0, %v841_v12, 0.0  ;;  %v52_v16 = vsel %vm30_vm0, %v846_v13, 0.0  ;;  %v49_v17 = vsel %vm30_vm0, %v851_v14, 0.0  ;;  %v862_v18 = vld [vmem:[%s1448_s0 + $0x58] sm:$0xff]  ;;  %v867_v19 = vld [vmem:[%s1448_s0 + $0x50] sm:$0xff]  ;;  %v872_v20 = vld [vmem:[%s1448_s0 + $0x48] sm:$0xff] }
   0x5   :  { %v64_v21 = vsel %vm30_vm0, %v862_v18, 0.0  ;;  %v61_v22 = vsel %vm30_vm0, %v867_v19, 0.0  ;;  %v58_v23 = vsel %vm30_vm0, %v872_v20, 0.0  ;;  %v883_v24 = vld [vmem:[%s1448_s0 + $0x70] sm:$0xff]  ;;  %v888_v25 = vld [vmem:[%s1448_s0 + $0x68] sm:$0xff]  ;;  %v893_v26 = vld [vmem:[%s1448_s0 + $0x60] sm:$0xff] }
   0x6   :  { %v73_v27 = vsel %vm30_vm0, %v883_v24, 0.0  ;;  %v70_v28 = vsel %vm30_vm0, %v888_v25, 0.0  ;;  %v67_v29 = vsel %vm30_vm0, %v893_v26, 0.0  ;;  %v904_v30 = vld [vmem:[%s1448_s0 + $0x78] sm:$0xff]  ;;  %v913_v41 = vld [vmem:[%s1449_s1] ss:$0 sm:$0xff] }
   0x7   :  { %v76_v31 = vsel %vm30_vm0, %v904_v30, 0.0  ;;  %v710_v33 = vpop.eup %709 }
   0x8   :  { %v80_v34 = vmul.f32 32.0, %v710_v33  ;;  %vm84_vm1 = vweird.f32 %v710_v33 }
   0xa   :  { %v81_v35 = vsub.f32 1.0, %v80_v34 }
   0xb   :  { %47 = vadd.xlane.f32.xlu2 %v46_v9  ;;  %41 = vadd.xlane.f32.xlu1 %v40_v10 }
   0xc   :  { %35 = vadd.xlane.f32.xlu0 %v34_v11  ;;  %v82_v36 = vmul.f32 %v710_v33, %v81_v35 }
   0xe   :  { %v83_v37 = vadd.f32 %v710_v33, %v82_v36 }
  0x10   :  { %v908_v38 = vsel %vm84_vm1, %v710_v33, %v83_v37 }
  0x13   :  { %56 = vadd.xlane.f32.xlu2 %v55_v15  ;;  %53 = vadd.xlane.f32.xlu1 %v52_v16 }
  0x14   :  { %50 = vadd.xlane.f32.xlu0 %v49_v17 }
  0x1b   :  { %65 = vadd.xlane.f32.xlu2 %v64_v21  ;;  %62 = vadd.xlane.f32.xlu1 %v61_v22 }
  0x1c   :  { %59 = vadd.xlane.f32.xlu0 %v58_v23 }
  0x23   :  { %74 = vadd.xlane.f32.xlu2 %v73_v27  ;;  %71 = vadd.xlane.f32.xlu1 %v70_v28 }
  0x24   :  { %68 = vadd.xlane.f32.xlu0 %v67_v29 }
  0x2c   :  { %77 = vadd.xlane.f32.xlu0 %v76_v31 }
  0x76   :  { %v45_v39 = vpop.xlane.xlu2 %44  ;;  %v39_v40 = vpop.xlane.xlu1 %38 }
  0x77   :  { %v90_v42 = vmul.f32 %v908_v38, %v45_v39  ;;  %v88_v43 = vmul.f32 %v908_v38, %v39_v40  ;;  %v33_v44 = vpop.xlane.xlu0 %32 }
  0x78   :  { %v86_v45 = vmul.f32 %v908_v38, %v33_v44 }
  0x79   :  { %v106_v46 = vsub.f32 %v799_v0, %v90_v42  ;;  %v104_v47 = vsub.f32 %v804_v1, %v88_v43 }
  0x7a   :  { %v102_v48 = vsub.f32 %v809_v2, %v86_v45 }
  0x7b   :  { %v922_v49 = vmul.f32 %v913_v41, %v106_v46  ;;  %v925_v50 = vmul.f32 %v913_v41, %v104_v47  ;;  %v120_v51 = vmul.f32 %v104_v47, %v104_v47  ;;  %v122_v28 = vmul.f32 %v106_v46, %v106_v46 }
  0x7c   :  { %v928_v52 = vmul.f32 %v913_v41, %v102_v48  ;;  %v118_v53 = vmul.f32 %v102_v48, %v102_v48 }
  0x7d   :  { %v140_v54 = vsel %vm30_vm0, %v120_v51, 0.0 }
  0x7e   :  { %v48_v55 = vpop.xlane.xlu2 %47  ;;  %v42_v56 = vpop.xlane.xlu1 %41  ;;  %141 = vadd.xlane.f32.xlu0 %v140_v54  ;;  %v134_v57 = vsel %vm30_vm0, %v118_v53, 0.0 }
  0x7f   :  { %v91_v58 = vmul.f32 %v908_v38, %v48_v55  ;;  %v89_v59 = vmul.f32 %v908_v38, %v42_v56  ;;  %135 = vadd.xlane.f32.xlu1 %v134_v57  ;;  %v36_v60 = vpop.xlane.xlu0 %35 }
  0x80   :  { %v87_v61 = vmul.f32 %v908_v38, %v36_v60 }
  0x81   :  { %v107_v62 = vsub.f32 %v820_v6, %v91_v58  ;;  %v105_v63 = vsub.f32 %v825_v7, %v89_v59 }
  0x82   :  { %v103_v0 = vsub.f32 %v830_v8, %v87_v61 }
  0x83   :  { %v939_v1 = vmul.f32 %v913_v41, %v107_v62  ;;  %v942_v2 = vmul.f32 %v913_v41, %v105_v63  ;;  %v123_v3 = vmul.f32 %v107_v62, %v107_v62  ;;  %v121_v4 = vmul.f32 %v105_v63, %v105_v63 }
  0x84   :  { %v945_v5 = vmul.f32 %v913_v41, %v103_v0  ;;  %v119_v9 = vmul.f32 %v103_v0, %v103_v0 }
  0x85   :  { %v149_v10 = vsel %vm30_vm0, %v123_v3, 0.0  ;;  %v143_v6 = vsel %vm30_vm0, %v121_v4, 0.0 }
  0x86   :  { %v57_v11 = vpop.xlane.xlu2 %56  ;;  %150 = vadd.xlane.f32.xlu0 %v149_v10  ;;  %v137_v7 = vsel %vm30_vm0, %v119_v9, 0.0  ;;  %v54_v8 = vpop.xlane.xlu1 %53 }
  0x87   :  { %v94_v15 = vmul.f32 %v908_v38, %v57_v11  ;;  %144 = vadd.xlane.f32.xlu1 %v143_v6  ;;  %138 = vadd.xlane.f32.xlu2 %v137_v7  ;;  %v51_v16 = vpop.xlane.xlu0 %50  ;;  %v93_v17 = vmul.f32 %v908_v38, %v54_v8 }
  0x88   :  { %v92_v21 = vmul.f32 %v908_v38, %v51_v16 }
  0x89   :  { %v110_v22 = vsub.f32 %v841_v12, %v94_v15  ;;  %v109_v23 = vsub.f32 %v846_v13, %v93_v17  ;;  %v146_v12 = vsel %vm30_vm0, %v122_v28, 0.0 }
  0x8a   :  { %v108_v27 = vsub.f32 %v851_v14, %v92_v21 }
  0x8b   :  { %v957_v29 = vmul.f32 %v913_v41, %v110_v22  ;;  %v960_v31 = vmul.f32 %v913_v41, %v109_v23  ;;  %v126_v32 = vmul.f32 %v110_v22, %v110_v22  ;;  %v125_v43 = vmul.f32 %v109_v23, %v109_v23 }
  0x8c   :  { %v963_v33 = vmul.f32 %v913_v41, %v108_v27  ;;  %v124_v34 = vmul.f32 %v108_v27, %v108_v27 }
  0x8d   :  { %v158_v35 = vsel %vm30_vm0, %v126_v32, 0.0  ;;  %v155_v54 = vsel %vm30_vm0, %v125_v43, 0.0 }
  0x8e   :  { %v66_v36 = vpop.xlane.xlu2 %65  ;;  %159 = vadd.xlane.f32.xlu0 %v158_v35  ;;  %v152_v13 = vsel %vm30_vm0, %v124_v34, 0.0  ;;  %v63_v14 = vpop.xlane.xlu1 %62 }
  0x8f   :  { %v97_v37 = vmul.f32 %v908_v38, %v66_v36  ;;  %147 = vadd.xlane.f32.xlu2 %v146_v12  ;;  %153 = vadd.xlane.f32.xlu1 %v152_v13  ;;  %v60_v39 = vpop.xlane.xlu0 %59  ;;  %v96_v40 = vmul.f32 %v908_v38, %v63_v14 }
  0x90   :  { %v95_v42 = vmul.f32 %v908_v38, %v60_v39 }
  0x91   :  { %v113_v44 = vsub.f32 %v862_v18, %v97_v37  ;;  %v112_v45 = vsub.f32 %v867_v19, %v96_v40 }
  0x92   :  { %v111_v46 = vsub.f32 %v872_v20, %v95_v42 }
  0x93   :  { %v975_v47 = vmul.f32 %v913_v41, %v113_v44  ;;  %v978_v48 = vmul.f32 %v913_v41, %v112_v45  ;;  %v129_v51 = vmul.f32 %v113_v44, %v113_v44  ;;  %v128_v61 = vmul.f32 %v112_v45, %v112_v45 }
  0x94   :  { %v981_v53 = vmul.f32 %v913_v41, %v111_v46  ;;  %v127_v55 = vmul.f32 %v111_v46, %v111_v46 }
  0x95   :  { %v167_v56 = vsel %vm30_vm0, %v129_v51, 0.0  ;;  %v164_v6 = vsel %vm30_vm0, %v128_v61, 0.0 }
  0x96   :  { %v75_v18 = vpop.xlane.xlu2 %74  ;;  %168 = vadd.xlane.f32.xlu0 %v167_v56  ;;  %v161_v19 = vsel %vm30_vm0, %v127_v55, 0.0  ;;  %v72_v20 = vpop.xlane.xlu1 %71 }
  0x97   :  { %v100_v57 = vmul.f32 %v908_v38, %v75_v18  ;;  %156 = vadd.xlane.f32.xlu2 %v155_v54  ;;  %162 = vadd.xlane.f32.xlu1 %v161_v19  ;;  %v69_v58 = vpop.xlane.xlu0 %68  ;;  %v99_v59 = vmul.f32 %v908_v38, %v72_v20 }
  0x98   :  { %v98_v60 = vmul.f32 %v908_v38, %v69_v58 }
  0x99   :  { %v116_v62 = vsub.f32 %v883_v24, %v100_v57  ;;  %v115_v63 = vsub.f32 %v888_v25, %v99_v59 }
  0x9a   :  { %v114_v0 = vsub.f32 %v893_v26, %v98_v60 }
  0x9b   :  { %v993_v3 = vmul.f32 %v913_v41, %v116_v62  ;;  %v996_v4 = vmul.f32 %v913_v41, %v115_v63  ;;  %v132_v9 = vmul.f32 %v116_v62, %v116_v62  ;;  %v131_v8 = vmul.f32 %v115_v63, %v115_v63 }
  0x9c   :  { %v999_v10 = vmul.f32 %v913_v41, %v114_v0  ;;  %v130_v11 = vmul.f32 %v114_v0, %v114_v0 }
  0x9d   :  { %v176_v7 = vsel %vm30_vm0, %v132_v9, 0.0  ;;  %v173_v17 = vsel %vm30_vm0, %v131_v8, 0.0 }
  0x9e   :  { %177 = vadd.xlane.f32.xlu0 %v176_v7  ;;  %v170_v24 = vsel %vm30_vm0, %v130_v11, 0.0 }
  0x9f   :  { %165 = vadd.xlane.f32.xlu2 %v164_v6  ;;  %171 = vadd.xlane.f32.xlu1 %v170_v24  ;;  %v78_v25 = vpop.xlane.xlu0 %77 }
  0xa0   :  { %v101_v26 = vmul.f32 %v908_v38, %v78_v25 }
  0xa2   :  { %v117_v15 = vsub.f32 %v904_v30, %v101_v26 }
  0xa4   :  { %v1007_v16 = vmul.f32 %v913_v41, %v117_v15  ;;  %v133_v21 = vmul.f32 %v117_v15, %v117_v15 }
  0xa6   :  { %v179_v22 = vsel %vm30_vm0, %v133_v21, 0.0 }
  0xa7   :  { %174 = vadd.xlane.f32.xlu2 %v173_v17  ;;  %180 = vadd.xlane.f32.xlu1 %v179_v22 }
  0xf1   :  { %v142_v23 = vpop.xlane.xlu0 %141 }
  0xf2   :  { %v136_v27 = vpop.xlane.xlu1 %135  ;;  %v184_v28 = vmul.f32 0.032258064, %v142_v23 }
  0xf3   :  { %v182_v32 = vmul.f32 0.032258064, %v136_v27 }
  0xf4   :  { %711 = vrsqrt.f32 %v184_v28  ;;  %vm229_vm2 = vcmp.eq.f32.partialorder %v184_v28, inf  ;;  %vm231_vm3 = vcmp.eq.f32.partialorder %v184_v28, 0.0  ;;  %v232_v58 = vand.u32 2147483648, %v184_v28 }
  0xf5   :  { %713 = vrsqrt.f32 %v182_v32  ;;  %vm205_vm4 = vcmp.eq.f32.partialorder %v182_v32, inf  ;;  %vm207_vm5 = vcmp.eq.f32.partialorder %v182_v32, 0.0  ;;  %v208_v6 = vand.u32 2147483648, %v182_v32 }
  0xf9   :  { %v151_v38 = vpop.xlane.xlu0 %150 }
  0xfa   :  { %v712_v34 = vpop.eup %711  ;;  %v145_v35 = vpop.xlane.xlu1 %144  ;;  %v1011_v36 = vmul.f32 0.032258064, %v151_v38 }
  0xfb   :  { %v139_v30 = vpop.xlane.xlu2 %138  ;;  %v714_v41 = vpop.eup %713  ;;  %v223_v12 = vmul.f32 %v712_v34, %v184_v28  ;;  %v1013_v13 = vmul.f32 0.032258064, %v145_v35 }
  0xfc   :  { %v1015_v14 = vmul.f32 0.032258064, %v139_v30  ;;  %v199_v37 = vmul.f32 %v714_v41, %v182_v32  ;;  %715 = vrsqrt.f32 %v1011_v36  ;;  %vm265_vm7 = vcmp.eq.f32.partialorder %v1011_v36, inf }
  0xfd   :  { %v224_v39 = vmul.f32 %v712_v34, %v223_v12  ;;  %717 = vrsqrt.f32 %v1013_v13  ;;  %vm241_vm6 = vcmp.eq.f32.partialorder %v1013_v13, inf  ;;  %vm267_vm8 = vcmp.eq.f32.partialorder %v1011_v36, 0.0 }
  0xfe   :  { %v200_v40 = vmul.f32 %v714_v41, %v199_v37  ;;  %719 = vrsqrt.f32 %v1015_v14  ;;  %vm243_vm9 = vcmp.eq.f32.partialorder %v1013_v13, 0.0  ;;  %vm217_vm10 = vcmp.eq.f32.partialorder %v1015_v14, inf }
  0xff   :  { %v225_v42 = vmul.f32 0.5, %v224_v39  ;;  %vm219_vm11 = vcmp.eq.f32.partialorder %v1015_v14, 0.0  ;;  %v268_v39 = vand.u32 2147483648, %v1011_v36 }
 0x100   :  { %v201_v43 = vmul.f32 0.5, %v200_v40 }
 0x101   :  { %v226_v44 = vsub.f32 1.5, %v225_v42  ;;  %v160_v25 = vpop.xlane.xlu0 %159 }
 0x102   :  { %v716_v45 = vpop.eup %715  ;;  %v202_v46 = vsub.f32 1.5, %v201_v43  ;;  %v154_v54 = vpop.xlane.xlu1 %153 }
 0x103   :  { %v148_v51 = vpop.xlane.xlu2 %147  ;;  %v718_v55 = vpop.eup %717  ;;  %v227_v56 = vmul.f32 %v712_v34, %v226_v44  ;;  %v259_v18 = vmul.f32 %v716_v45, %v1011_v36  ;;  %v1024_v60 = vmul.f32 0.032258064, %v154_v54  ;;  %v1035_v34 = vmul.f32 0.032258064, %v160_v25 }
 0x104   :  { %v1021_v19 = vmul.f32 0.032258064, %v148_v51  ;;  %v720_v20 = vpop.eup %719  ;;  %v203_v57 = vmul.f32 %v714_v41, %v202_v46  ;;  %v235_v59 = vmul.f32 %v718_v55, %v1013_v13  ;;  %v220_v41 = vand.u32 2147483648, %v1015_v14 }
 0x105   :  { %v228_v61 = vmul.f32 %v227_v56, %v184_v28  ;;  %v211_v62 = vmul.f32 %v720_v20, %v1015_v14  ;;  %v260_v63 = vmul.f32 %v716_v45, %v259_v18 }
 0x106   :  { %721 = vrsqrt.f32 %v1021_v19  ;;  %v204_v0 = vmul.f32 %v203_v57, %v182_v32  ;;  %v236_v9 = vmul.f32 %v718_v55, %v235_v59  ;;  %v256_v46 = vand.u32 2147483648, %v1021_v19 }
 0x107   :  { %v230_v11 = vsel %vm229_vm2, %v184_v28, %v228_v61  ;;  %v212_v7 = vmul.f32 %v720_v20, %v211_v62  ;;  %v261_v24 = vmul.f32 0.5, %v260_v63  ;;  %723 = vrsqrt.f32 %v1024_v60 }
 0x108   :  { %v206_v26 = vsel %vm205_vm4, %v182_v32, %v204_v0  ;;  %v233_v8 = vsel %vm231_vm3, %v232_v58, %v230_v11  ;;  %v237_v15 = vmul.f32 0.5, %v236_v9  ;;  %v244_v28 = vand.u32 2147483648, %v1013_v13 }
 0x109   :  { %v209_v17 = vsel %vm207_vm5, %v208_v6, %v206_v26  ;;  %v1031_v21 = vadd.f32 1e-06, %v233_v8  ;;  %v213_v22 = vmul.f32 0.5, %v212_v7  ;;  %v262_v38 = vsub.f32 1.5, %v261_v24 }
 0x10a   :  { %v1033_v23 = vadd.f32 1e-06, %v209_v17  ;;  %v238_v27 = vsub.f32 1.5, %v237_v15  ;;  %vm253_vm3 = vcmp.eq.f32.partialorder %v1021_v19, inf  ;;  %vm255_vm5 = vcmp.eq.f32.partialorder %v1021_v19, 0.0 }
 0x10b   :  { %725 = vrcp.f32 %v1031_v21  ;;  %v214_v30 = vsub.f32 1.5, %v213_v22  ;;  %v263_v37 = vmul.f32 %v716_v45, %v262_v38  ;;  %v443_v42 = vand.u32 2147483647, %v1031_v21 }
 0x10c   :  { %v1037_v35 = vpop.eup %721  ;;  %727 = vrcp.f32 %v1033_v23  ;;  %v239_v32 = vmul.f32 %v718_v55, %v238_v27  ;;  %v415_v51 = vand.u32 2147483647, %v1033_v23  ;;  %vm439_vm12 = vweird.f32 %v1031_v21 }
 0x10d   :  { %v1049_v12 = vpop.eup %723  ;;  %v247_v40 = vmul.f32 %v1037_v35, %v1021_v19  ;;  %729 = vrsqrt.f32 %v1035_v34  ;;  %v215_v44 = vmul.f32 %v720_v20, %v214_v30  ;;  %v445_v45 = vand.u32 2147483648, %v1031_v21 }
 0x10e   :  { %v240_v43 = vmul.f32 %v239_v32, %v1013_v13  ;;  %v264_v54 = vmul.f32 %v263_v37, %v1011_v36  ;;  %vm411_vm13 = vweird.f32 %v1033_v23  ;;  %v271_v57 = vmul.f32 %v1049_v12, %v1024_v60 }
 0x10f   :  { %v216_v18 = vmul.f32 %v215_v44, %v1015_v14  ;;  %v248_v20 = vmul.f32 %v1037_v35, %v247_v40  ;;  %v417_v59 = vand.u32 2147483648, %v1033_v23  ;;  %vm1078_vm14 = vcmp.eq.f32.partialorder %v443_v42, 8.507059e+37  ;;  %v1115_v42 = vld [vmem:[%s1450_s2] ss:$0 sm:$0xff] }
 0x110   :  { %v242_v56 = vsel %vm241_vm6, %v1013_v13, %v240_v43  ;;  %v266_v63 = vsel %vm265_vm7, %v1011_v36, %v264_v54  ;;  %v446_v24 = vor.u32 1.1754944e-38, %v445_v45  ;;  %v272_v17 = vmul.f32 %v1049_v12, %v271_v57 }
 0x111   :  { %v726_v55 = vpop.eup %725  ;;  %v245_v62 = vsel %vm243_vm9, %v244_v28, %v242_v56  ;;  %v218_v11 = vsel %vm217_vm10, %v1015_v14, %v216_v18  ;;  %v269_v26 = vsel %vm267_vm8, %v268_v39, %v266_v63  ;;  %v249_v15 = vmul.f32 0.5, %v248_v20 }
 0x112   :  { %v728_v58 = vpop.eup %727  ;;  %v435_v61 = vmul.f32 %v726_v55, %v1031_v21  ;;  %v1082_v6 = vadd.f32 1e-06, %v245_v62  ;;  %v221_v25 = vsel %vm219_vm11, %v220_v41, %v218_v11  ;;  %vm440_vm15 = vweird.f32 %v726_v55 }
 0x113   :  { %v407_v0 = vmul.f32 %v728_v58, %v1033_v23  ;;  %v1087_v7 = vpop.eup %729  ;;  %v1095_v27 = vadd.f32 1e-06, %v221_v25  ;;  %v1097_v38 = vadd.f32 1e-06, %v269_v26  ;;  %vm412_vm1 = vweird.f32 %v728_v58  ;;  %vm441_vm4 = vmor %vm439_vm12, %vm440_vm15 }
 0x114   :  { %v436_v13 = vsub.f32 1.0, %v435_v61  ;;  %731 = vrcp.f32 %v1082_v6  ;;  %vm1099_vm2 = vcmp.eq.f32.partialorder %v415_v51, 8.507059e+37  ;;  %v459_v36 = vand.u32 2147483648, %v1082_v6  ;;  %vm413_vm6 = vmor %vm411_vm13, %vm412_vm1 }
 0x115   :  { %v408_v8 = vsub.f32 1.0, %v407_v0  ;;  %v418_v32 = vor.u32 1.1754944e-38, %v417_v59  ;;  %v457_v41 = vand.u32 2147483647, %v1082_v6  ;;  %733 = vrcp.f32 %v1095_v27 }
 0x116   :  { %v437_v22 = vmul.f32 %v726_v55, %v436_v13  ;;  %735 = vrcp.f32 %v1097_v38  ;;  %v250_v39 = vsub.f32 1.5, %v249_v15  ;;  %v280_v40 = vand.u32 2147483648, %v1024_v60 }
 0x117   :  { %v409_v28 = vmul.f32 %v728_v58, %v408_v8  ;;  %vm453_vm7 = vweird.f32 %v1082_v6  ;;  %v273_v21 = vmul.f32 0.5, %v272_v17  ;;  %v295_v44 = vmul.f32 %v1087_v7, %v1035_v34 }
 0x118   :  { %v438_v30 = vadd.f32 %v726_v55, %v437_v22  ;;  %v460_v56 = vor.u32 1.1754944e-38, %v459_v36  ;;  %v429_v18 = vand.u32 2147483647, %v1095_v27  ;;  %vm277_vm8 = vcmp.eq.f32.partialorder %v1024_v60, inf }
 0x119   :  { %v410_v37 = vadd.f32 %v728_v58, %v409_v28  ;;  %vm1131_vm9 = vcmp.eq.f32.partialorder %v457_v41, 8.507059e+37  ;;  %vm425_vm10 = vweird.f32 %v1095_v27  ;;  %v485_v61 = vand.u32 2147483647, %v1097_v38 }
 0x11a   :  { %v442_v43 = vsel %vm441_vm4, %v726_v55, %v438_v30  ;;  %v732_v51 = vpop.eup %731  ;;  %v487_v62 = vand.u32 2147483648, %v1097_v38  ;;  %v251_v63 = vmul.f32 %v1037_v35, %v250_v39  ;;  %v274_v11 = vsub.f32 1.5, %v273_v21 }
 0x11b   :  { %v414_v45 = vsel %vm413_vm6, %v728_v58, %v410_v37  ;;  %v447_v54 = vsel %vm1078_vm14, %v446_v24, %v442_v43  ;;  %v449_v20 = vmul.f32 %v732_v51, %v1082_v6  ;;  %v431_v58 = vand.u32 2147483648, %v1095_v27  ;;  %v734_v0 = vpop.eup %733  ;;  %v157_v24 = vpop.xlane.xlu2 %156 }
 0x11c   :  { %v419_v23 = vsel %vm1099_vm2, %v418_v32, %v414_v45  ;;  %v652_v55 = vmul.f32 %v925_v50, %v447_v54  ;;  %vm279_vm11 = vcmp.eq.f32.partialorder %v1024_v60, 0.0  ;;  %v296_v13 = vmul.f32 %v1087_v7, %v295_v44  ;;  %v736_v25 = vpop.eup %735 }
 0x11d   :  { %v650_v59 = vmul.f32 %v928_v52, %v419_v23  ;;  %v450_v9 = vsub.f32 1.0, %v449_v20  ;;  %vm454_vm12 = vweird.f32 %v732_v51  ;;  %v421_v26 = vmul.f32 %v734_v0, %v1095_v27  ;;  %v163_v27 = vpop.xlane.xlu1 %162 }
 0x11e   :  { %v672_v50 = vadd.f32 %v1115_v42, %v652_v55  ;;  %v252_v8 = vmul.f32 %v251_v63, %v1021_v19  ;;  %vm426_vm13 = vweird.f32 %v734_v0  ;;  %v477_v15 = vmul.f32 %v736_v25, %v1097_v38  ;;  %vm455_vm14 = vmor %vm453_vm7, %vm454_vm12 }
 0x11f   :  { %v670_v52 = vadd.f32 %v1115_v42, %v650_v59  ;;  %v451_v35 = vmul.f32 %v732_v51, %v450_v9  ;;  %v275_v17 = vmul.f32 %v1049_v12, %v274_v11  ;;  %v422_v22 = vsub.f32 1.0, %v421_v26  ;;  %vm427_vm2 = vmor %vm425_vm10, %vm426_vm13 }
 0x120   :  { %688 = vst.msk [vmem:[%s1451_s3 + $0x10] sm:$0xff] %vm30_vm0, %v672_v50  ;;  %v254_v28 = vsel %vm253_vm3, %v1021_v19, %v252_v8  ;;  %v297_v14 = vmul.f32 0.5, %v296_v13  ;;  %v1160_v36 = vmul.f32 0.032258064, %v157_v24  ;;  %v478_v30 = vsub.f32 1.0, %v477_v15 }
 0x121   :  { %686 = vst.msk [vmem:[%s1451_s3] sm:$0xff] %vm30_vm0, %v670_v52  ;;  %v452_v32 = vadd.f32 %v732_v51, %v451_v35  ;;  %v257_v12 = vsel %vm255_vm5, %v256_v46, %v254_v28  ;;  %v276_v41 = vmul.f32 %v275_v17, %v1024_v60  ;;  %v423_v37 = vmul.f32 %v734_v0, %v422_v22 }
 0x122   :  { %v1170_v39 = vadd.f32 1e-06, %v257_v12  ;;  %v298_v43 = vsub.f32 1.5, %v297_v14  ;;  %737 = vrsqrt.f32 %v1160_v36  ;;  %v479_v44 = vmul.f32 %v736_v25, %v478_v30 }
 0x123   :  { %v456_v21 = vsel %vm455_vm14, %v732_v51, %v452_v32  ;;  %vm482_vm15 = vweird.f32 %v736_v25  ;;  %v278_v19 = vsel %vm277_vm8, %v1024_v60, %v276_v41  ;;  %v424_v45 = vadd.f32 %v734_v0, %v423_v37  ;;  %v166_v32 = vpop.xlane.xlu2 %165 }
 0x124   :  { %v461_v46 = vsel %vm1131_vm9, %v460_v56, %v456_v21  ;;  %vm481_vm1 = vweird.f32 %v1097_v38  ;;  %739 = vrcp.f32 %v1170_v39  ;;  %vm430_vm3 = vcmp.eq.f32.partialorder %v429_v18, 8.507059e+37 }
 0x125   :  { %v653_v6 = vmul.f32 %v942_v2, %v461_v46  ;;  %v432_v51 = vor.u32 1.1754944e-38, %v431_v58  ;;  %v480_v54 = vadd.f32 %v736_v25, %v479_v44  ;;  %v428_v23 = vsel %vm427_vm2, %v734_v0, %v424_v45  ;;  %vm483_vm4 = vmor %vm481_vm1, %vm482_vm15  ;;  %v172_v30 = vpop.xlane.xlu1 %171 }
 0x126   :  { %v488_v55 = vor.u32 1.1754944e-38, %v487_v62  ;;  %v281_v56 = vsel %vm279_vm11, %v280_v40, %v278_v19  ;;  %v299_v38 = vmul.f32 %v1087_v7, %v298_v43  ;;  %vm486_vm5 = vcmp.eq.f32.partialorder %v485_v61, 8.507059e+37 }
 0x127   :  { %v673_v20 = vadd.f32 %v1115_v42, %v653_v6  ;;  %v433_v2 = vsel %vm430_vm3, %v432_v51, %v428_v23  ;;  %v484_v57 = vsel %vm483_vm4, %v736_v25, %v480_v54  ;;  %v1191_v63 = vadd.f32 1e-06, %v281_v56 }
 0x128   :  { %v738_v59 = vpop.eup %737  ;;  %v651_v18 = vmul.f32 %v945_v5, %v433_v2  ;;  %v489_v58 = vsel %vm486_vm5, %v488_v55, %v484_v57  ;;  %v300_v7 = vmul.f32 %v299_v38, %v1035_v34  ;;  %v169_v5 = vpop.xlane.xlu0 %168  ;;  %vm301_vm6 = vcmp.eq.f32.partialorder %v1035_v34, inf }
 0x129   :  { %689 = vst.msk [vmem:[%s1451_s3 + $0x18] sm:$0xff] %vm30_vm0, %v673_v20  ;;  %v655_v60 = vmul.f32 %v939_v1, %v489_v58  ;;  %v283_v40 = vmul.f32 %v738_v59, %v1160_v36  ;;  %741 = vrcp.f32 %v1191_v63  ;;  %v304_v9 = vand.u32 2147483648, %v1035_v34 }
 0x12a   :  { %v740_v62 = vpop.eup %739  ;;  %v671_v61 = vadd.f32 %v1115_v42, %v651_v18  ;;  %v302_v1 = vsel %vm301_vm6, %v1035_v34, %v300_v7  ;;  %vm303_vm7 = vcmp.eq.f32.partialorder %v1035_v34, 0.0  ;;  %v1212_v13 = vmul.f32 0.032258064, %v163_v27 }
 0x12b   :  { %v675_v0 = vadd.f32 %v1115_v42, %v655_v60  ;;  %v463_v50 = vmul.f32 %v740_v62, %v1170_v39  ;;  %v284_v11 = vmul.f32 %v738_v59, %v283_v40  ;;  %v471_v25 = vand.u32 2147483647, %v1170_v39 }
 0x12c   :  { %687 = vst.msk [vmem:[%s1451_s3 + $0x8] sm:$0xff] %vm30_vm0, %v671_v61  ;;  %v305_v52 = vsel %vm303_vm7, %v304_v9, %v302_v1  ;;  %v1219_v26 = vmul.f32 0.032258064, %v169_v5  ;;  %v473_v8 = vand.u32 2147483648, %v1170_v39  ;;  %743 = vrsqrt.f32 %v1212_v13 }
 0x12d   :  { %691 = vst.msk [vmem:[%s1451_s3 + $0x28] sm:$0xff] %vm30_vm0, %v675_v0  ;;  %v464_v24 = vsub.f32 1.0, %v463_v50  ;;  %v1222_v35 = vadd.f32 1e-06, %v305_v52  ;;  %v285_v15 = vmul.f32 0.5, %v284_v11  ;;  %vm468_vm8 = vweird.f32 %v740_v62 }
 0x12e   :  { %745 = vrsqrt.f32 %v1219_v26  ;;  %vm467_vm9 = vweird.f32 %v1170_v39  ;;  %vm289_vm10 = vcmp.eq.f32.partialorder %v1160_v36, inf  ;;  %vm291_vm11 = vcmp.eq.f32.partialorder %v1160_v36, 0.0 }
 0x12f   :  { %v465_v34 = vmul.f32 %v740_v62, %v464_v24  ;;  %v742_v17 = vpop.eup %741  ;;  %747 = vrcp.f32 %v1222_v35  ;;  %vm472_vm12 = vcmp.eq.f32.partialorder %v471_v25, 8.507059e+37  ;;  %v286_v14 = vsub.f32 1.5, %v285_v15  ;;  %vm469_vm13 = vmor %vm467_vm9, %vm468_vm8 }
 0x130   :  { %v491_v28 = vmul.f32 %v742_v17, %v1191_v63  ;;  %v474_v12 = vor.u32 1.1754944e-38, %v473_v8  ;;  %v499_v41 = vand.u32 2147483647, %v1191_v63  ;;  %v501_v37 = vand.u32 2147483648, %v1191_v63 }
 0x131   :  { %v466_v22 = vadd.f32 %v740_v62, %v465_v34  ;;  %v292_v39 = vand.u32 2147483648, %v1160_v36  ;;  %vm495_vm14 = vweird.f32 %v1191_v63  ;;  %v287_v44 = vmul.f32 %v738_v59, %v286_v14 }
 0x132   :  { %v492_v21 = vsub.f32 1.0, %v491_v28  ;;  %v744_v19 = vpop.eup %743  ;;  %vm496_vm15 = vweird.f32 %v742_v17  ;;  %v1235_v45 = vmul.f32 0.032258064, %v166_v32  ;;  %v1237_v6 = vmul.f32 0.032258064, %v172_v30  ;;  %v175_v30 = vpop.xlane.xlu2 %174 }
 0x133   :  { %v470_v43 = vsel %vm469_vm13, %v740_v62, %v466_v22  ;;  %v288_v55 = vmul.f32 %v287_v44, %v1160_v36  ;;  %v307_v56 = vmul.f32 %v744_v19, %v1212_v13  ;;  %vm1242_vm1 = vcmp.eq.f32.partialorder %v499_v41, 8.507059e+37  ;;  %vm497_vm2 = vmor %vm495_vm14, %vm496_vm15  ;;  %v178_v62 = vpop.xlane.xlu0 %177 }
 0x134   :  { %v475_v46 = vsel %vm472_vm12, %v474_v12, %v470_v43  ;;  %v746_v51 = vpop.eup %745  ;;  %v493_v23 = vmul.f32 %v742_v17, %v492_v21  ;;  %v502_v2 = vor.u32 1.1754944e-38, %v501_v37  ;;  %749 = vrsqrt.f32 %v1235_v45 }
 0x135   :  { %v654_v54 = vmul.f32 %v922_v49, %v475_v46  ;;  %v748_v38 = vpop.eup %747  ;;  %v331_v57 = vmul.f32 %v746_v51, %v1219_v26  ;;  %v527_v18 = vand.u32 2147483647, %v1222_v35  ;;  %v529_v58 = vand.u32 2147483648, %v1222_v35 }
 0x136   :  { %v494_v59 = vadd.f32 %v742_v17, %v493_v23  ;;  %v519_v49 = vmul.f32 %v748_v38, %v1222_v35  ;;  %v290_v60 = vsel %vm289_vm10, %v1160_v36, %v288_v55  ;;  %v308_v7 = vmul.f32 %v744_v19, %v307_v56 }
 0x137   :  { %v674_v27 = vadd.f32 %v1115_v42, %v654_v54  ;;  %v332_v40 = vmul.f32 %v746_v51, %v331_v57  ;;  %v293_v63 = vsel %vm291_vm11, %v292_v39, %v290_v60  ;;  %751 = vrsqrt.f32 %v1237_v6 }
 0x138   :  { %v498_v61 = vsel %vm497_vm2, %v742_v17, %v494_v59  ;;  %v520_v5 = vsub.f32 1.0, %v519_v49  ;;  %v1267_v50 = vadd.f32 1e-06, %v293_v63  ;;  %v309_v9 = vmul.f32 0.5, %v308_v7 }
 0x139   :  { %690 = vst.msk [vmem:[%s1451_s3 + $0x20] sm:$0xff] %vm30_vm0, %v674_v27  ;;  %v503_v0 = vsel %vm1242_vm1, %v502_v2, %v498_v61  ;;  %v333_v1 = vmul.f32 0.5, %v332_v40  ;;  %vm524_vm3 = vweird.f32 %v748_v38  ;;  %v1270_v25 = vmul.f32 0.032258064, %v178_v62 }
 0x13a   :  { %v656_v11 = vmul.f32 %v963_v33, %v503_v0  ;;  %v521_v24 = vmul.f32 %v748_v38, %v520_v5  ;;  %v750_v52 = vpop.eup %749  ;;  %vm523_vm4 = vweird.f32 %v1222_v35  ;;  %753 = vrcp.f32 %v1267_v50 }
 0x13b   :  { %vm313_vm5 = vcmp.eq.f32.partialorder %v1212_v13, inf  ;;  %vm315_vm6 = vcmp.eq.f32.partialorder %v1212_v13, 0.0  ;;  %v310_v15 = vsub.f32 1.5, %v309_v9  ;;  %v334_v34 = vsub.f32 1.5, %v333_v1  ;;  %vm525_vm7 = vmor %vm523_vm4, %vm524_vm3 }
 0x13c   :  { %v676_v36 = vadd.f32 %v1115_v42, %v656_v11  ;;  %v522_v8 = vadd.f32 %v748_v38, %v521_v24  ;;  %vm528_vm8 = vcmp.eq.f32.partialorder %v527_v18, 8.507059e+37  ;;  %v530_v33 = vor.u32 1.1754944e-38, %v529_v58 }
 0x13d   :  { %v316_v17 = vand.u32 2147483648, %v1212_v13  ;;  %v319_v22 = vmul.f32 %v750_v52, %v1235_v45  ;;  %v752_v28 = vpop.eup %751  ;;  %v311_v14 = vmul.f32 %v744_v19, %v310_v15  ;;  %v335_v32 = vmul.f32 %v746_v51, %v334_v34 }
 0x13e   :  { %692 = vst.msk [vmem:[%s1451_s3 + $0x30] sm:$0xff] %vm30_vm0, %v676_v36  ;;  %v526_v35 = vsel %vm525_vm7, %v748_v38, %v522_v8  ;;  %755 = vrsqrt.f32 %v1270_v25  ;;  %vm337_vm9 = vcmp.eq.f32.partialorder %v1219_v26, inf  ;;  %v343_v37 = vmul.f32 %v752_v28, %v1237_v6 }
 0x13f   :  { %v531_v12 = vsel %vm528_vm8, %v530_v33, %v526_v35  ;;  %v320_v41 = vmul.f32 %v750_v52, %v319_v22  ;;  %v312_v43 = vmul.f32 %v311_v14, %v1212_v13  ;;  %v336_v21 = vmul.f32 %v335_v32, %v1219_v26 }
 0x140   :  { %v658_v39 = vmul.f32 %v957_v29, %v531_v12  ;;  %vm339_vm10 = vcmp.eq.f32.partialorder %v1219_v26, 0.0  ;;  %v754_v44 = vpop.eup %753  ;;  %v340_v19 = vand.u32 2147483648, %v1219_v26  ;;  %v344_v51 = vmul.f32 %v752_v28, %v343_v37 }
 0x141   :  { %v321_v46 = vmul.f32 0.5, %v320_v41  ;;  %v1291_v54 = vmul.f32 0.032258064, %v175_v30  ;;  %v505_v55 = vmul.f32 %v754_v44, %v1267_v50  ;;  %v515_v56 = vand.u32 2147483648, %v1267_v50 }
 0x142   :  { %v678_v23 = vadd.f32 %v1115_v42, %v658_v39  ;;  %v314_v29 = vsel %vm313_vm5, %v1212_v13, %v312_v43  ;;  %v338_v20 = vsel %vm337_vm9, %v1219_v26, %v336_v21  ;;  %v345_v57 = vmul.f32 0.5, %v344_v51 }
 0x143   :  { %v317_v38 = vsel %vm315_vm6, %v316_v17, %v314_v29  ;;  %v322_v2 = vsub.f32 1.5, %v321_v46  ;;  %v506_v59 = vsub.f32 1.0, %v505_v55  ;;  %v341_v18 = vsel %vm339_vm10, %v340_v19, %v338_v20 }
 0x144   :  { %v756_v27 = vpop.eup %755  ;;  %694 = vst.msk [vmem:[%s1451_s3 + $0x40] sm:$0xff] %vm30_vm0, %v678_v23  ;;  %v1308_v49 = vadd.f32 1e-06, %v317_v38  ;;  %757 = vrsqrt.f32 %v1291_v54  ;;  %v1313_v13 = vadd.f32 1e-06, %v341_v18  ;;  %v346_v60 = vsub.f32 1.5, %v345_v57 }
 0x145   :  { %v323_v58 = vmul.f32 %v750_v52, %v322_v2  ;;  %v367_v7 = vmul.f32 %v756_v27, %v1270_v25  ;;  %v507_v40 = vmul.f32 %v754_v44, %v506_v59  ;;  %vm510_vm11 = vweird.f32 %v754_v44 }
 0x146   :  { %v513_v62 = vand.u32 2147483647, %v1267_v50  ;;  %759 = vrcp.f32 %v1308_v49  ;;  %vm325_vm12 = vcmp.eq.f32.partialorder %v1235_v45, inf  ;;  %vm327_vm13 = vcmp.eq.f32.partialorder %v1235_v45, 0.0 }
 0x147   :  { %761 = vrcp.f32 %v1313_v13  ;;  %v328_v26 = vand.u32 2147483648, %v1235_v45  ;;  %v508_v61 = vadd.f32 %v754_v44, %v507_v40  ;;  %vm509_vm14 = vweird.f32 %v1267_v50 }
 0x148   :  { %v324_v5 = vmul.f32 %v323_v58, %v1235_v45  ;;  %vm349_vm15 = vcmp.eq.f32.partialorder %v1237_v6, inf  ;;  %vm511_vm1 = vmor %vm509_vm14, %vm510_vm11  ;;  %v516_v63 = vor.u32 1.1754944e-38, %v515_v56  ;;  %v347_v0 = vmul.f32 %v752_v28, %v346_v60 }
 0x149   :  { %vm351_vm2 = vcmp.eq.f32.partialorder %v1237_v6, 0.0  ;;  %v368_v9 = vmul.f32 %v756_v27, %v367_v7  ;;  %v512_v11 = vsel %vm511_vm1, %v754_v44, %v508_v61  ;;  %vm514_vm3 = vcmp.eq.f32.partialorder %v513_v62, 8.507059e+37 }
 0x14a   :  { %v1326_v1 = vpop.eup %757  ;;  %v326_v24 = vsel %vm325_vm12, %v1235_v45, %v324_v5  ;;  %v352_v52 = vand.u32 2147483648, %v1237_v6  ;;  %v517_v36 = vsel %vm514_vm3, %v516_v63, %v512_v11  ;;  %v348_v8 = vmul.f32 %v347_v0, %v1237_v6 }
 0x14b   :  { %v329_v50 = vsel %vm327_vm13, %v328_v26, %v326_v24  ;;  %v369_v15 = vmul.f32 0.5, %v368_v9  ;;  %v657_v33 = vmul.f32 %v960_v31, %v517_v36  ;;  %vm373_vm4 = vcmp.eq.f32.partialorder %v1270_v25, inf }
 0x14c   :  { %v760_v34 = vpop.eup %759  ;;  %v1334_v17 = vadd.f32 1e-06, %v329_v50  ;;  %v355_v22 = vmul.f32 %v1326_v1, %v1291_v54  ;;  %v350_v45 = vsel %vm349_vm15, %v1237_v6, %v348_v8  ;;  %vm375_vm5 = vcmp.eq.f32.partialorder %v1270_v25, 0.0 }
 0x14d   :  { %v762_v28 = vpop.eup %761  ;;  %v533_v35 = vmul.f32 %v760_v34, %v1308_v49  ;;  %v370_v14 = vsub.f32 1.5, %v369_v15  ;;  %v376_v32 = vand.u32 2147483648, %v1270_v25  ;;  %v677_v31 = vadd.f32 %v1115_v42, %v657_v33 }
 0x14e   :  { %vm537_vm6 = vweird.f32 %v1308_v49  ;;  %v561_v30 = vmul.f32 %v762_v28, %v1313_v13  ;;  %763 = vrcp.f32 %v1334_v17  ;;  %v541_v41 = vand.u32 2147483647, %v1308_v49 }
 0x14f   :  { %v534_v12 = vsub.f32 1.0, %v533_v35  ;;  %v543_v37 = vand.u32 2147483648, %v1308_v49  ;;  %v569_v39 = vand.u32 2147483647, %v1313_v13  ;;  %693 = vst.msk [vmem:[%s1451_s3 + $0x38] sm:$0xff] %vm30_vm0, %v677_v31  ;;  %v353_v21 = vsel %vm351_vm2, %v352_v52, %v350_v45 }
 0x150   :  { %v562_v43 = vsub.f32 1.0, %v561_v30  ;;  %v371_v44 = vmul.f32 %v756_v27, %v370_v14  ;;  %v356_v19 = vmul.f32 %v1326_v1, %v355_v22  ;;  %vm538_vm7 = vweird.f32 %v760_v34 }
 0x151   :  { %v535_v46 = vmul.f32 %v760_v34, %v534_v12  ;;  %v571_v51 = vand.u32 2147483648, %v1313_v13  ;;  %v1360_v23 = vadd.f32 1e-06, %v353_v21  ;;  %vm566_vm8 = vweird.f32 %v762_v28  ;;  %vm539_vm11 = vmor %vm537_vm6, %vm538_vm7 }
 0x152   :  { %v563_v55 = vmul.f32 %v762_v28, %v562_v43  ;;  %v372_v56 = vmul.f32 %v371_v44, %v1270_v25  ;;  %v357_v29 = vmul.f32 0.5, %v356_v19  ;;  %vm542_vm9 = vcmp.eq.f32.partialorder %v541_v41, 8.507059e+37 }
 0x153   :  { %v536_v38 = vadd.f32 %v760_v34, %v535_v46  ;;  %vm565_vm10 = vweird.f32 %v1313_v13  ;;  %765 = vrcp.f32 %v1360_v23  ;;  %v544_v20 = vor.u32 1.1754944e-38, %v543_v37  ;;  %v181_v13 = vpop.xlane.xlu1 %180 }
 0x154   :  { %v764_v6 = vpop.eup %763  ;;  %v564_v2 = vadd.f32 %v762_v28, %v563_v55  ;;  %v374_v57 = vsel %vm373_vm4, %v1270_v25, %v372_v56  ;;  %v358_v27 = vsub.f32 1.5, %v357_v29  ;;  %vm567_vm12 = vmor %vm565_vm10, %vm566_vm8  ;;  %vm570_vm13 = vcmp.eq.f32.partialorder %v569_v39, 8.507059e+37 }
 0x155   :  { %v540_v59 = vsel %vm539_vm11, %v760_v34, %v536_v38  ;;  %v572_v18 = vor.u32 1.1754944e-38, %v571_v51  ;;  %v547_v58 = vmul.f32 %v764_v6, %v1334_v17  ;;  %v555_v40 = vand.u32 2147483647, %v1334_v17 }
 0x156   :  { %v545_v60 = vsel %vm542_vm9, %v544_v20, %v540_v59  ;;  %v568_v7 = vsel %vm567_vm12, %v762_v28, %v564_v2  ;;  %v377_v49 = vsel %vm375_vm5, %v376_v32, %v374_v57  ;;  %v557_v0 = vand.u32 2147483648, %v1334_v17 }
 0x157   :  { %v659_v62 = vmul.f32 %v981_v53, %v545_v60  ;;  %v573_v26 = vsel %vm570_vm13, %v572_v18, %v568_v7  ;;  %v548_v61 = vsub.f32 1.0, %v547_v58  ;;  %v1375_v5 = vadd.f32 1e-06, %v377_v49 }
 0x158   :  { %v661_v63 = vmul.f32 %v975_v47, %v573_v26  ;;  %v359_v9 = vmul.f32 %v1326_v1, %v358_v27  ;;  %v1380_v11 = vmul.f32 0.032258064, %v181_v13  ;;  %vm552_vm14 = vweird.f32 %v764_v6 }
 0x159   :  { %v766_v24 = vpop.eup %765  ;;  %v679_v52 = vadd.f32 %v1115_v42, %v659_v62  ;;  %v549_v36 = vmul.f32 %v764_v6, %v548_v61  ;;  %767 = vrcp.f32 %v1375_v5  ;;  %vm361_vm15 = vcmp.eq.f32.partialorder %v1291_v54, inf }
 0x15a   :  { %v681_v53 = vadd.f32 %v1115_v42, %v661_v63  ;;  %v575_v25 = vmul.f32 %v766_v24, %v1360_v23  ;;  %vm363_vm1 = vcmp.eq.f32.partialorder %v1291_v54, 0.0  ;;  %vm551_vm2 = vweird.f32 %v1334_v17 }
 0x15b   :  { %695 = vst.msk [vmem:[%s1451_s3 + $0x48] sm:$0xff] %vm30_vm0, %v679_v52  ;;  %v550_v47 = vadd.f32 %v764_v6, %v549_v36  ;;  %v360_v1 = vmul.f32 %v359_v9, %v1291_v54  ;;  %769 = vrsqrt.f32 %v1380_v11  ;;  %vm553_vm3 = vmor %vm551_vm2, %vm552_vm14  ;;  %vm556_vm4 = vcmp.eq.f32.partialorder %v555_v40, 8.507059e+37 }
 0x15c   :  { %697 = vst.msk [vmem:[%s1451_s3 + $0x58] sm:$0xff] %vm30_vm0, %v681_v53  ;;  %v558_v50 = vor.u32 1.1754944e-38, %v557_v0  ;;  %v576_v8 = vsub.f32 1.0, %v575_v25  ;;  %v364_v15 = vand.u32 2147483648, %v1291_v54  ;;  %v583_v33 = vand.u32 2147483647, %v1360_v23 }
 0x15d   :  { %v554_v34 = vsel %vm553_vm3, %v764_v6, %v550_v47  ;;  %v585_v17 = vand.u32 2147483648, %v1360_v23  ;;  %v362_v22 = vsel %vm361_vm15, %v1291_v54, %v360_v1  ;;  %vm580_vm5 = vweird.f32 %v766_v24 }
 0x15e   :  { %v559_v28 = vsel %vm556_vm4, %v558_v50, %v554_v34  ;;  %v577_v35 = vmul.f32 %v766_v24, %v576_v8  ;;  %v365_v45 = vsel %vm363_vm1, %v364_v15, %v362_v22  ;;  %vm579_vm6 = vweird.f32 %v1360_v23 }
 0x15f   :  { %v768_v14 = vpop.eup %767  ;;  %v660_v32 = vmul.f32 %v978_v48, %v559_v28  ;;  %v403_v31 = vadd.f32 1e-06, %v365_v45  ;;  %vm581_vm7 = vmor %vm579_vm6, %vm580_vm5  ;;  %v586_v39 = vor.u32 1.1754944e-38, %v585_v17  ;;  %vm584_vm8 = vcmp.eq.f32.partialorder %v583_v33, 8.507059e+37 }
 0x160   :  { %v578_v30 = vadd.f32 %v766_v24, %v577_v35  ;;  %v603_v12 = vmul.f32 %v768_v14, %v1375_v5  ;;  %v611_v44 = vand.u32 2147483647, %v1375_v5  ;;  %v613_v19 = vand.u32 2147483648, %v1375_v5 }
 0x161   :  { %v770_v41 = vpop.eup %769  ;;  %v680_v37 = vadd.f32 %v1115_v42, %v660_v32  ;;  %771 = vrcp.f32 %v403_v31  ;;  %vm608_vm9 = vweird.f32 %v768_v14  ;;  %vm607_vm10 = vweird.f32 %v1375_v5 }
 0x162   :  { %v582_v43 = vsel %vm581_vm7, %v766_v24, %v578_v30  ;;  %v604_v21 = vsub.f32 1.0, %v603_v12  ;;  %v379_v54 = vmul.f32 %v770_v41, %v1380_v11  ;;  %vm609_vm11 = vmor %vm607_vm10, %vm608_vm9  ;;  %v614_v6 = vor.u32 1.1754944e-38, %v613_v19 }
 0x163   :  { %696 = vst.msk [vmem:[%s1451_s3 + $0x50] sm:$0xff] %vm30_vm0, %v680_v37  ;;  %v587_v48 = vsel %vm584_vm8, %v586_v39, %v582_v43  ;;  %vm612_vm12 = vcmp.eq.f32.partialorder %v611_v44, 8.507059e+37  ;;  %v597_v58 = vand.u32 2147483647, %v403_v31  ;;  %v599_v13 = vand.u32 2147483648, %v403_v31 }
 0x164   :  { %v662_v46 = vmul.f32 %v999_v10, %v587_v48  ;;  %v605_v51 = vmul.f32 %v768_v14, %v604_v21  ;;  %v380_v23 = vmul.f32 %v770_v41, %v379_v54  ;;  %vm385_vm14 = vcmp.eq.f32.partialorder %v1380_v11, inf }
 0x165   :  { %v388_v49 = vand.u32 2147483648, %v1380_v11  ;;  %vm593_vm15 = vweird.f32 %v403_v31  ;;  %vm387_vm1 = vcmp.eq.f32.partialorder %v1380_v11, 0.0  ;;  %v600_v26 = vor.u32 1.1754944e-38, %v599_v13 }
 0x166   :  { %v682_v55 = vadd.f32 %v1115_v42, %v662_v46  ;;  %v606_v56 = vadd.f32 %v768_v14, %v605_v51  ;;  %v381_v29 = vmul.f32 0.5, %v380_v23  ;;  %vm598_vm3 = vcmp.eq.f32.partialorder %v597_v58, 8.507059e+37 }
 0x167   :  { %v772_v38 = vpop.eup %771 }
 0x168   :  { %698 = vst.msk [vmem:[%s1451_s3 + $0x60] sm:$0xff] %vm30_vm0, %v682_v55  ;;  %v610_v20 = vsel %vm609_vm11, %v768_v14, %v606_v56  ;;  %v589_v10 = vmul.f32 %v772_v38, %v403_v31  ;;  %v382_v2 = vsub.f32 1.5, %v381_v29  ;;  %vm594_vm13 = vweird.f32 %v772_v38 }
 0x169   :  { %v615_v57 = vsel %vm612_vm12, %v614_v6, %v610_v20  ;;  %vm595_vm2 = vmor %vm593_vm15, %vm594_vm13 }
 0x16a   :  { %v664_v27 = vmul.f32 %v993_v3, %v615_v57  ;;  %v590_v59 = vsub.f32 1.0, %v589_v10  ;;  %v383_v18 = vmul.f32 %v770_v41, %v382_v2 }
 0x16c   :  { %v684_v60 = vadd.f32 %v1115_v42, %v664_v27  ;;  %v591_v7 = vmul.f32 %v772_v38, %v590_v59  ;;  %v384_v40 = vmul.f32 %v383_v18, %v1380_v11 }
 0x16e   :  { %700 = vst.msk [vmem:[%s1451_s3 + $0x70] sm:$0xff] %vm30_vm0, %v684_v60  ;;  %v592_v3 = vadd.f32 %v772_v38, %v591_v7  ;;  %v386_v62 = vsel %vm385_vm14, %v1380_v11, %v384_v40 }
 0x16f   :  { %v389_v61 = vsel %vm387_vm1, %v388_v49, %v386_v62 }
 0x170   :  { %v596_v5 = vsel %vm595_vm2, %v772_v38, %v592_v3  ;;  %v405_v63 = vadd.f32 1e-06, %v389_v61 }
 0x171   :  { %v601_v0 = vsel %vm598_vm3, %v600_v26, %v596_v5 }
 0x172   :  { %v663_v9 = vmul.f32 %v996_v4, %v601_v0  ;;  %773 = vrcp.f32 %v405_v63  ;;  %v627_v53 = vand.u32 2147483648, %v405_v63  ;;  %v625_v47 = vand.u32 2147483647, %v405_v63 }
 0x173   :  { %vm621_vm5 = vweird.f32 %v405_v63 }
 0x174   :  { %v683_v24 = vadd.f32 %v1115_v42, %v663_v9  ;;  %v628_v50 = vor.u32 1.1754944e-38, %v627_v53  ;;  %vm626_vm7 = vcmp.eq.f32.partialorder %v625_v47, 8.507059e+37 }
 0x176   :  { %699 = vst.msk [vmem:[%s1451_s3 + $0x68] sm:$0xff] %vm30_vm0, %v683_v24 }
 0x178   :  { %v774_v52 = vpop.eup %773 }
 0x179   :  { %v617_v36 = vmul.f32 %v774_v52, %v405_v63  ;;  %vm622_vm4 = vweird.f32 %v774_v52 }
 0x17a   :  { %vm623_vm6 = vmor %vm621_vm5, %vm622_vm4 }
 0x17b   :  { %v618_v11 = vsub.f32 1.0, %v617_v36 }
 0x17d   :  { %v619_v25 = vmul.f32 %v774_v52, %v618_v11 }
 0x17f   :  { %v620_v1 = vadd.f32 %v774_v52, %v619_v25 }
 0x181   :  { %v624_v4 = vsel %vm623_vm6, %v774_v52, %v620_v1 }
 0x182   :  { %v629_v8 = vsel %vm626_vm7, %v628_v50, %v624_v4 }
 0x183   :  { %v665_v15 = vmul.f32 %v1007_v16, %v629_v8 }
 0x185   :  { %v685_v34 = vadd.f32 %v1115_v42, %v665_v15 }
 0x187   :  { %701 = vst.msk [vmem:[%s1451_s3 + $0x78] sm:$0xff] %vm30_vm0, %v685_v34 }

// kernel: squeeze.2
= control target key start
LH: loop header
LB: loop body
LE: loop exit
PB: predicated region body
PF: predicated region fallthrough
CT: control target
= control target key end

     0   :  { %s89_s8 = smov 116   ;;  %s90_s9 = smov 120   ;;  %vm3_vm0 = vcmask 31744   ;;  %s128_s0 = inlined_call_operand.vmem [shape: f32[8,16], index: 0, kind: input, shape index: {}]   ;;  %s129_s1 = inlined_call_operand.vmem [shape: f32[2,4,4,4], index: 1, kind: output, shape index: {}]  }
   0x1   :  { %v6_v0 = vld [vmem:[%s128_s0] sm:$0xff]   ;;  %s88_s0 = smov 124  }
   0x2   :  { %7 = vrot.lane.b32.xlu0 %v6_v0, %s88_s0  ;;  %23 = vrot.lane.b32.xlu1 %v6_v0, %s89_s8  ;;  %5 = vst.msk [vmem:[#allocation0] ss:$8 sm:$0xf0] %vm3_vm0, %v6_v0  }
   0x3   :  { %4 = vst.msk [vmem:[#allocation0] ss:$8 sm:$0xf] %vm3_vm0, %v6_v0  }
   0xa   :  { %15 = vrot.lane.b32.xlu0 %v6_v0, %s90_s9 }
  0x74   :  { %v8_v1 = vpop.permute.xlu0 %7   ;;  %v24_v2 = vpop.permute.xlu1 %23  }
  0x75   :  { %11 = vst.msk [vmem:[#allocation0 + $0x1] ss:$8 sm:$0xf] %vm3_vm0, %v8_v1  }
  0x76   :  { %13 = vst.msk [vmem:[#allocation0 + $0x1] ss:$8 sm:$0xf0] %vm3_vm0, %v8_v1  }
  0x77   :  { %27 = vst.msk [vmem:[#allocation0 + $0x3] ss:$8 sm:$0xf] %vm3_vm0, %v24_v2  }
  0x78   :  { %29 = vst.msk [vmem:[#allocation0 + $0x3] ss:$8 sm:$0xf0] %vm3_vm0, %v24_v2  }
  0x7c   :  { %v16_v3 = vpop.permute.xlu0 %15  }
  0x7d   :  { %19 = vst.msk [vmem:[#allocation0 + $0x2] ss:$8 sm:$0xf] %vm3_vm0, %v16_v3  }
  0x7e   :  { %21 = vst.msk [vmem:[#allocation0 + $0x2] ss:$8 sm:$0xf0] %vm3_vm0, %v16_v3  }
  0x84   :  { %v32_v4 = vld [vmem:[#allocation0] sm:$0xf]  ;;  %v37_v5 = vld [vmem:[#allocation0 + $0x8] sm:$0xf]  ;;  %v43_v6 = vld [vmem:[#allocation0 + $0x10] sm:$0xf] }
  0x85   :  { %35 = vst [vmem:[%s129_s1] sm:$0xf] %v32_v4  ;;  %v49_v7 = vld [vmem:[#allocation0 + $0x18] sm:$0xf]  ;;  %v55_v8 = vld [vmem:[#allocation0 + $0x20] sm:$0xf] }
  0x86   :  { %78 = vst [vmem:[%s129_s1 + $0x4] sm:$0xf] %v37_v5  ;;  %v61_v9 = vld [vmem:[#allocation0 + $0x28] sm:$0xf]  ;;  %v67_v10 = vld [vmem:[#allocation0 + $0x30] sm:$0xf] }
  0x87   :  { %79 = vst [vmem:[%s129_s1 + $0x8] sm:$0xf] %v43_v6  ;;  %v73_v11 = vld [vmem:[#allocation0 + $0x38] sm:$0xf] }
  0x88   :  { %80 = vst [vmem:[%s129_s1 + $0xc] sm:$0xf] %v49_v7 }
  0x89   :  { %81 = vst [vmem:[%s129_s1 + $0x10] sm:$0xf] %v55_v8 }
  0x8a   :  { %82 = vst [vmem:[%s129_s1 + $0x14] sm:$0xf] %v61_v9 }
  0x8b   :  { %83 = vst [vmem:[%s129_s1 + $0x18] sm:$0xf] %v67_v10 }
  0x8c   :  { %84 = vst [vmem:[%s129_s1 + $0x1c] sm:$0xf] %v73_v11 }

// kernel: group_attention_two_dim_fc_forward.3
= control target key start
LH: loop header
LB: loop body
LE: loop exit
PB: predicated region body
PF: predicated region fallthrough
CT: control target
= control target key end

     0   :  { %s1317_s20 = smov 0   ;;  %s2478_s0 = inlined_call_operand.vmem [shape: f32[16,4,32], index: 0, kind: input, shape index: {}]   ;;  %s2479_s1 = inlined_call_operand.vmem [shape: f32[4,16], index: 1, kind: input, shape index: {}]   ;;  %s2480_s2 = inlined_call_operand.vmem [shape: f32[4,16], index: 2, kind: input, shape index: {}]   ;;  %s2481_s3 = inlined_call_operand.vmem [shape: f32[2,32], index: 3, kind: input, shape index: {}]   ;;  %s2482_s4 = inlined_call_operand.<no memory space> [shape: f32[1,1], index: 4, kind: input, shape index: {}]   ;;  %s2483_s5 = inlined_call_operand.vmem [shape: f32[16,16], index: 5, kind: output, shape index: {}]  }
   0x1   :  { %10 = sst [smem:[#allocation2]] %s2482_s4 }
   0x2 LB: > { %s1323_s21 = sadd.s32 4294967295, %s1282_s20   ;;  %p1169_p0 = scmp.ge.s32.totalorder %s1282_s20, 1  ;;  %s1282_s20 = sphi %s1317_s20, %s16_s20  }
   0x3   : > { %p189_p1 = scmp.lt.s32.totalorder %s1282_s20, 3 }
   0x5   : > { %p190_p2 = pnand %p1169_p0, %p189_p1 }
   0x7   : > { %193 = sbr.rel (%p190_p2) target bundleno = 428 (0x1ac), region = 40 }
   0xc   : > { %v2484_v0 = vlaneseq  ;;  %v235_v2 = vld [vmem:[%s2480_s2] sm:$0xf]  ;;  %s1170_s25 = sshll.u32 %s1323_s21, 3  ;;  %vm680_vm5 = vcmask 261120   ;;  %s729_s9 = sld [smem:[#allocation2]] }
   0xd   : > { %v234_v3 = vld [vmem:[%s2479_s1] sm:$0xf]  ;;  %v273_v4 = vperm.slane %v235_v2, 0  ;;  %v339_v9 = vperm.slane %v235_v2, 1  ;;  %v437_v11 = vperm.slane %v235_v2, 2  ;;  %v535_v12 = vperm.slane %v235_v2, 3 }
   0xe   : > { %v238_v1 = vshrl.u32 %v2484_v0, 7  ;;  %v302_v5 = vperm.slane %v234_v3, 1  ;;  %v236_v6 = vperm.slane %v234_v3, 0  ;;  %v400_v8 = vperm.slane %v234_v3, 2  ;;  %p217_p3 = scmp.lt.s32.totalorder %s1170_s25, 15  ;;  %p222_p4 = scmp.lt.s32.totalorder %s1323_s21, 1 }
   0xf   : > { %v498_v10 = vperm.slane %v234_v3, 3 }
  0x10   : > { %1201 = vset.pattern.permute.xlu2 %v238_v1  ;;  %1200 = vset.pattern.permute.xlu1 %v238_v1  ;;  %v245_v7 = vadd.s32 8, %v238_v1  ;;  %s2682_s25 = smov (!%p217_p3, %s1170_s25), 15  ;;  %s2684_s21 = smov (!%p222_p4, %s1323_s21), 1 }
  0x11   : > { %1199 = vset.pattern.permute.xlu0 %v238_v1  ;;  %s1171_s26 = sshll.u32 %s2682_s25, 2  ;;  %s1172_s10 = sshll.u32 %s2684_s21, 3 }
  0x12   : > { %s220_s29 = scalar_lea.vmem %s2478_s0, %s1171_s26  ;;  %s225_s13 = scalar_lea.vmem %s2483_s5, %s1172_s10 }
  0x13   : > { %v230_v15 = vld [vmem:[%s220_s29 + $0x10] sm:$0xf]  ;;  %v227_v17 = vld [vmem:[%s220_s29 + $0x4] sm:$0xf]  ;;  %v226_v18 = vld [vmem:[%s220_s29] sm:$0xf] }
  0x14   : > { %v1340_v16 = vperm.slane %v230_v15, 0  ;;  %v229_v19 = vld [vmem:[%s220_s29 + $0xc] sm:$0xf]  ;;  %v228_v20 = vld [vmem:[%s220_s29 + $0x8] sm:$0xf]  ;;  %v1342_v22 = vperm.slane %v230_v15, 1 }
  0x15   : > { %v232_v21 = vld [vmem:[%s220_s29 + $0x18] sm:$0xf]  ;;  %v1344_v23 = vperm.slane %v227_v17, 1  ;;  %v231_v24 = vld [vmem:[%s220_s29 + $0x14] sm:$0xf]  ;;  %v1348_v26 = vperm.slane %v227_v17, 0 }
  0x16   : > { %v1346_v25 = vld [vmem:[%s220_s29 + $0x1c] sm:$0xf]  ;;  %v1350_v27 = vperm.slane %v226_v18, 0  ;;  %v1352_v28 = vperm.slane %v226_v18, 1  ;;  %v1354_v29 = vperm.slane %v229_v19, 1  ;;  %v1356_v30 = vperm.slane %v229_v19, 0 }
  0x17   : > { %2510 = vst [vmem:[#allocation3_spill] sm:$0xff] %v1344_v23  ;;  %v1358_v31 = vperm.slane %v228_v20, 0  ;;  %v1360_v32 = vperm.slane %v228_v20, 1  ;;  %v1362_v33 = vperm.slane %v232_v21, 1  ;;  %v1366_v35 = vperm.slane %v232_v21, 0 }
  0x18   : > { %278 = vperm.xlu1 %1200, %v273_v4   ;;  %307 = vperm.xlu2 %1201, %v302_v5   ;;  %2511 = vst [vmem:[#allocation4_spill] sm:$0xff] %v1352_v28  ;;  %v1368_v36 = vperm.slane %v231_v24, 0  ;;  %v1370_v37 = vperm.slane %v231_v24, 1  ;;  %v1373_v38 = vperm.slane %v1346_v25, 0  ;;  %v1376_v40 = vperm.slane %v230_v15, 2 }
  0x19   : > { %241 = vperm.xlu0 %1199, %v236_v6   ;;  %2512 = vst [vmem:[#allocation5_spill] sm:$0xff] %v1366_v35  ;;  %v1379_v42 = vperm.slane %v227_v17, 2  ;;  %v1384_v45 = vperm.slane %v226_v18, 2  ;;  %v1387_v47 = vperm.slane %v229_v19, 2  ;;  %v1390_v49 = vperm.slane %v228_v20, 2 }
  0x1a   : > { %2513 = vst [vmem:[#allocation6_spill] sm:$0xff] %v1368_v36  ;;  %v1393_v51 = vperm.slane %v232_v21, 2  ;;  %v1395_v52 = vperm.slane %v230_v15, 3  ;;  %v1398_v54 = vperm.slane %v231_v24, 2  ;;  %v1401_v55 = vperm.slane %v1346_v25, 1 }
  0x1b   : > { %2514 = vst [vmem:[#allocation7_spill] sm:$0xff] %v1373_v38  ;;  %v1403_v57 = vperm.slane %v227_v17, 3  ;;  %v1405_v58 = vperm.slane %v226_v18, 3  ;;  %v1407_v59 = vperm.slane %v229_v19, 3  ;;  %v1409_v60 = vperm.slane %v228_v20, 3 }
  0x1c   : > { %2515 = vst [vmem:[#allocation8_spill] sm:$0xff] %v1376_v40 }
  0x1d   : > { %2516 = vst [vmem:[#allocation9_spill] sm:$0xff] %v1379_v42 }
  0x1e   : > { %2517 = vst [vmem:[#allocation10_spill] sm:$0xff] %v1387_v47 }
  0x1f   : > { %2518 = vst [vmem:[#allocation11_spill] sm:$0xff] %v1390_v49 }
  0x20   : > { %1202 = vset.pattern.permute.xlu1 %v245_v7  ;;  %1204 = vset.pattern.permute.xlu2 %v245_v7  ;;  %2519 = vst [vmem:[#allocation12_spill] sm:$0xff] %v1393_v51 }
  0x21   : > { %405 = vperm.xlu0 %1199, %v400_v8   ;;  %2520 = vst [vmem:[#allocation13_spill] sm:$0xff] %v1398_v54 }
  0x22   : > { %2521 = vst [vmem:[#allocation14_spill] sm:$0xff] %v1401_v55 }
  0x23   : > { %2522 = vst [vmem:[#allocation15_spill] sm:$0xff] %v1405_v58 }
  0x24   : > { %2523 = vst [vmem:[#allocation16_spill] sm:$0xff] %v1407_v59 }
  0x25   : > { %2524 = vst [vmem:[#allocation17_spill] sm:$0xff] %v1409_v60 }
  0x28   : > { %284 = vperm.xlu1 %1202, %v273_v4   ;;  %313 = vperm.xlu2 %1204, %v302_v5   ;;  %v1423_v4 = vperm.slane %v231_v24, 3  ;;  %v1426_v5 = vperm.slane %v1346_v25, 2 }
  0x29   : > { %1205 = vset.pattern.permute.xlu0 %v245_v7 }
  0x2a   : > { %2526 = vst [vmem:[#allocation19_spill] sm:$0xff] %v1423_v4 }
  0x30   : > { %1203 = vset.pattern.permute.xlu1 %v238_v1  ;;  %350 = vperm.xlu2 %1204, %v339_v9  }
  0x31   : > { %247 = vperm.xlu0 %1205, %v236_v6  }
  0x38   : > { %344 = vperm.xlu1 %1203, %v339_v9   ;;  %1207 = vset.pattern.permute.xlu2 %v238_v1 }
  0x39   : > { %509 = vperm.xlu0 %1205, %v498_v10  }
  0x40   : > { %1206 = vset.pattern.permute.xlu1 %v245_v7  ;;  %442 = vperm.xlu2 %1207, %v437_v11  }
  0x48   : > { %411 = vperm.xlu1 %1206, %v400_v8   ;;  %503 = vperm.xlu2 %1207, %v498_v10  }
  0x50   : > { %448 = vperm.xlu1 %1206, %v437_v11   ;;  %1209 = vset.pattern.permute.xlu2 %v245_v7 }
  0x58   : > { %1208 = vset.pattern.permute.xlu1 %v238_v1  ;;  %546 = vperm.xlu2 %1209, %v535_v12   ;;  %v1417_v1 = vperm.slane %v232_v21, 3 }
  0x5a   : > { %2525 = vst [vmem:[#allocation18_spill] sm:$0xff] %v1417_v1 }
  0x60   : > { %540 = vperm.xlu1 %1208, %v535_v12  }
  0x72   : > { %v308_v13 = vpop.permute.xlu2 %307 }
  0x73   : > { %v331_v39 = vmul.f32 %v1342_v22, %v308_v13  ;;  %v325_v41 = vmul.f32 %v1344_v23, %v308_v13  ;;  %v323_v44 = vmul.f32 %v1352_v28, %v308_v13  ;;  %v329_v46 = vmul.f32 %v1354_v29, %v308_v13 }
  0x74   : > { %v327_v48 = vmul.f32 %v1360_v32, %v308_v13  ;;  %v335_v50 = vmul.f32 %v1362_v33, %v308_v13  ;;  %v333_v53 = vmul.f32 %v1370_v37, %v308_v13  ;;  %v337_v9 = vmul.f32 %v1401_v55, %v308_v13 }
  0x82   : > { %v1338_v14 = vpop.permute.xlu2 %313 }
  0x83   : > { %v1443_v11 = vmul.f32 %v1352_v28, %v1338_v14 }
  0x85   : > { %2531 = vst [vmem:[#allocation24_spill] sm:$0xff] %v1443_v11 }
  0x8a   : > { %v1381_v43 = vpop.permute.xlu2 %350  ;;  %v279_v56 = vpop.permute.xlu1 %278 }
  0x8b   : > { %v1364_v34 = vpop.permute.xlu0 %241  ;;  %v1429_v6 = vmul.f32 %v279_v56, %v1340_v16  ;;  %v1432_v7 = vmul.f32 %v279_v56, %v1348_v26  ;;  %v1435_v8 = vmul.f32 %v279_v56, %v1350_v27  ;;  %v1439_v10 = vmul.f32 %v279_v56, %v1356_v30 }
  0x8c   : > { %v265_v61 = vmul.f32 %v1340_v16, %v1364_v34  ;;  %v259_v62 = vmul.f32 %v1348_v26, %v1364_v34  ;;  %v257_v63 = vmul.f32 %v1350_v27, %v1364_v34  ;;  %v263_v2 = vmul.f32 %v1356_v30, %v1364_v34 }
  0x8d   : > { %v261_v3 = vmul.f32 %v1358_v31, %v1364_v34  ;;  %2527 = vst [vmem:[#allocation20_spill] sm:$0xff] %v1429_v6  ;;  %v1447_v12 = vmul.f32 %v1381_v43, %v1352_v28  ;;  %v269_v15 = vmul.f32 %v1366_v35, %v1364_v34  ;;  %v1452_v13 = vmul.f32 %v279_v56, %v1358_v31 }
  0x8e   : > { %2528 = vst [vmem:[#allocation21_spill] sm:$0xff] %v1432_v7  ;;  %v376_v18 = vadd.f32 %v331_v39, %v265_v61  ;;  %v370_v19 = vadd.f32 %v325_v41, %v259_v62  ;;  %v368_v20 = vadd.f32 %v323_v44, %v257_v63  ;;  %v374_v21 = vadd.f32 %v329_v46, %v263_v2 }
  0x8f   : > { %2529 = vst [vmem:[#allocation22_spill] sm:$0xff] %v1435_v8  ;;  %v372_v24 = vadd.f32 %v327_v48, %v261_v3  ;;  %v1455_v0 = vmul.f32 %v279_v56, %v1366_v35  ;;  %v1463_v7 = vmul.f32 %v1344_v23, %v1338_v14  ;;  %v355_v39 = vmul.f32 %v1381_v43, %v1344_v23 }
  0x90   : > { %2530 = vst [vmem:[#allocation23_spill] sm:$0xff] %v1439_v10  ;;  %v267_v10 = vmul.f32 %v1368_v36, %v1364_v34  ;;  %v1468_v41 = vmul.f32 %v279_v56, %v1368_v36  ;;  %v361_v44 = vmul.f32 %v1381_v43, %v1342_v22  ;;  %v380_v61 = vadd.f32 %v335_v50, %v269_v15 }
  0x91   : > { %2532 = vst [vmem:[#allocation25_spill] sm:$0xff] %v1452_v13  ;;  %v357_v62 = vmul.f32 %v1381_v43, %v1360_v32  ;;  %v367_v50 = vmul.f32 %v1381_v43, %v1401_v55  ;;  %v1486_v15 = vperm.slane %v1346_v25, 3  ;;  %v363_v11 = vmul.f32 %v1381_v43, %v1370_v37 }
  0x92   : > { %2533 = vst [vmem:[#allocation26_spill] sm:$0xff] %v1455_v0  ;;  %v378_v13 = vadd.f32 %v333_v53, %v267_v10  ;;  %v365_v4 = vmul.f32 %v1381_v43, %v1362_v33  ;;  %v271_v53 = vmul.f32 %v1373_v38, %v1364_v34  ;;  %v1496_v23 = vmul.f32 %v1342_v22, %v1338_v14 }
  0x93   : > { %v406_v17 = vpop.permute.xlu0 %405  ;;  %2534 = vst [vmem:[#allocation27_spill] sm:$0xff] %v1463_v7  ;;  %v359_v7 = vmul.f32 %v1381_v43, %v1354_v29  ;;  %v1499_v1 = vmul.f32 %v279_v56, %v1373_v38  ;;  %v1505_v43 = vmul.f32 %v1360_v32, %v1338_v14  ;;  %v1509_v34 = vmul.f32 %v1354_v29, %v1338_v14 }
  0x94   : > { %2535 = vst [vmem:[#allocation28_spill] sm:$0xff] %v1468_v41  ;;  %v429_v46 = vmul.f32 %v1376_v40, %v406_v17  ;;  %v423_v48 = vmul.f32 %v1379_v42, %v406_v17  ;;  %v421_v2 = vmul.f32 %v1384_v45, %v406_v17  ;;  %v427_v3 = vmul.f32 %v1387_v47, %v406_v17 }
  0x95   : > { %v425_v0 = vmul.f32 %v1390_v49, %v406_v17  ;;  %v433_v41 = vmul.f32 %v1393_v51, %v406_v17  ;;  %v431_v6 = vmul.f32 %v1398_v54, %v406_v17  ;;  %2536 = vst [vmem:[#allocation29_spill] sm:$0xff] %v1486_v15 }
  0x96   : > { %v474_v10 = vadd.f32 %v429_v46, %v376_v18  ;;  %v468_v28 = vadd.f32 %v423_v48, %v370_v19  ;;  %2537 = vst [vmem:[#allocation30_spill] sm:$0xff] %v1499_v1  ;;  %v466_v25 = vadd.f32 %v421_v2, %v368_v20  ;;  %v472_v15 = vadd.f32 %v427_v3, %v374_v21 }
  0x97   : > { %v470_v60 = vadd.f32 %v425_v0, %v372_v24  ;;  %v478_v59 = vadd.f32 %v433_v41, %v380_v61  ;;  %v1501_v58 = vadd.f32 %v431_v6, %v378_v13  ;;  %2538 = vst [vmem:[#allocation31_spill] sm:$0xff] %v1509_v34  ;;  %v1513_v18 = vmul.f32 %v1401_v55, %v1338_v14  ;;  %v2548_v55 = vld [vmem:[#allocation16_spill] sm:$0xff] }
  0x98   : > { %v1518_v0 = vmul.f32 %v1370_v37, %v1338_v14  ;;  %v1522_v6 = vmul.f32 %v1362_v33, %v1338_v14  ;;  %v382_v19 = vadd.f32 %v337_v9, %v271_v53  ;;  %v435_v24 = vmul.f32 %v1426_v5, %v406_v17 }
  0x99   : > { %2539 = vst [vmem:[#allocation32_spill] sm:$0xff] %v1513_v18 }
  0x9a   : > { %v1459_v8 = vpop.permute.xlu2 %442  ;;  %v285_v63 = vpop.permute.xlu1 %284  ;;  %2540 = vst [vmem:[#allocation33_spill] sm:$0xff] %v1518_v0  ;;  %v1593_v34 = vadd.f32 %v435_v24, %v382_v19 }
  0x9b   : > { %v287_v56 = vmul.f32 %v285_v63, %v1350_v27  ;;  %2541 = vst [vmem:[#allocation34_spill] sm:$0xff] %v1522_v6  ;;  %v1526_v20 = vmul.f32 %v1459_v8, %v1376_v40  ;;  %v1530_v13 = vmul.f32 %v1459_v8, %v1379_v42  ;;  %v289_v21 = vmul.f32 %v285_v63, %v1348_v26 }
  0x9c   : > { %v295_v14 = vmul.f32 %v285_v63, %v1340_v16  ;;  %v291_v9 = vmul.f32 %v285_v63, %v1358_v31  ;;  %v293_v48 = vmul.f32 %v285_v63, %v1356_v30  ;;  %v301_v61 = vmul.f32 %v285_v63, %v1373_v38 }
  0x9d   : > { %v1544_v2 = vmul.f32 %v1459_v8, %v1384_v45  ;;  %v1548_v3 = vmul.f32 %v1459_v8, %v1387_v47  ;;  %v1552_v17 = vmul.f32 %v1459_v8, %v1390_v49  ;;  %v297_v53 = vmul.f32 %v285_v63, %v1368_v36 }
  0x9e   : > { %v1556_v1 = vadd.f32 %v1447_v12, %v287_v56  ;;  %v1560_v6 = vmul.f32 %v1459_v8, %v1393_v51  ;;  %v1564_v0 = vmul.f32 %v1459_v8, %v1398_v54  ;;  %v299_v47 = vmul.f32 %v285_v63, %v1366_v35  ;;  %v2543_v12 = vld [vmem:[#allocation15_spill] sm:$0xff] }
  0x9f   : > { %v1577_v51 = vadd.f32 %v361_v44, %v295_v14  ;;  %v1579_v42 = vadd.f32 %v357_v62, %v291_v9  ;;  %v1581_v54 = vadd.f32 %v359_v7, %v293_v48  ;;  %v1583_v63 = vadd.f32 %v367_v50, %v301_v61  ;;  %v2551_v44 = vld [vmem:[#allocation17_spill] sm:$0xff]  ;;  %v2552_v62 = vld [vmem:[#allocation18_spill] sm:$0xff]  ;;  %v2556_v48 = vld [vmem:[#allocation19_spill] sm:$0xff] }
  0xa0   : > { %2542 = vst [vmem:[#allocation35_spill] sm:$0xff] %v1556_v1  ;;  %v1575_v1 = vadd.f32 %v355_v39, %v289_v21  ;;  %v1587_v36 = vadd.f32 %v363_v11, %v297_v53  ;;  %v1591_v38 = vmul.f32 %v1459_v8, %v1426_v5  ;;  %v1601_v21 = vadd.f32 %v365_v4, %v299_v47  ;;  %v1608_v8 = vld [vmem:[%s2481_s3 + $0x1] ss:$0 sm:$0xff]  ;;  %v2557_v61 = vld [vmem:[#allocation24_spill] sm:$0xff] }
  0xa1   : > { %2544 = vst [vmem:[#allocation15_spill] sm:$0xff] %v1577_v51  ;;  %v2554_v4 = vld [vmem:[#allocation3_spill] sm:$0xff] }
  0xa2   : > { %v1534_v41 = vpop.permute.xlu2 %503  ;;  %2545 = vst [vmem:[#allocation36_spill] sm:$0xff] %v1579_v42  ;;  %v2564_v42 = vld [vmem:[#allocation26_spill] sm:$0xff] }
  0xa3   : > { %v1567_v18 = vpop.permute.xlu0 %247  ;;  %v527_v49 = vmul.f32 %v1395_v52, %v1534_v41  ;;  %v521_v40 = vmul.f32 %v1403_v57, %v1534_v41  ;;  %v519_v56 = vmul.f32 %v2543_v12, %v1534_v41  ;;  %2546 = vst [vmem:[#allocation37_spill] sm:$0xff] %v1581_v54  ;;  %v525_v35 = vmul.f32 %v2548_v55, %v1534_v41 }
  0xa4   : > { %2547 = vst [vmem:[#allocation38_spill] sm:$0xff] %v1583_v63  ;;  %v258_v39 = vmul.f32 %v1350_v27, %v1567_v18  ;;  %v523_v7 = vmul.f32 %v2551_v44, %v1534_v41  ;;  %v531_v50 = vmul.f32 %v2552_v62, %v1534_v41  ;;  %v260_v27 = vmul.f32 %v1348_v26, %v1567_v18  ;;  %v2563_v63 = vld [vmem:[#allocation25_spill] sm:$0xff] }
  0xa5   : > { %2549 = vst [vmem:[#allocation16_spill] sm:$0xff] %v1587_v36  ;;  %v1603_v14 = vadd.f32 %v527_v49, %v474_v10  ;;  %v1610_v11 = vadd.f32 %v521_v40, %v468_v28  ;;  %v1612_v19 = vadd.f32 %v519_v56, %v466_v25  ;;  %v2555_v10 = vld [vmem:[#allocation4_spill] sm:$0xff]  ;;  %v1626_v40 = vadd.f32 %v525_v35, %v472_v15  ;;  %v2558_v15 = vld [vmem:[#allocation27_spill] sm:$0xff] }
  0xa6   : > { %2550 = vst [vmem:[#allocation39_spill] sm:$0xff] %v1591_v38  ;;  %v369_v53 = vadd.f32 %v2557_v61, %v258_v39  ;;  %v1635_v56 = vadd.f32 %v523_v7, %v470_v60  ;;  %v1654_v60 = vadd.f32 %v2558_v15, %v260_v27  ;;  %v2559_v39 = vld [vmem:[#allocation20_spill] sm:$0xff]  ;;  %v266_v27 = vmul.f32 %v1340_v16, %v1567_v18 }
  0xa7   : > { %2553 = vst [vmem:[#allocation17_spill] sm:$0xff] %v1601_v21  ;;  %v1643_v35 = vmul.f32 %v1608_v8, %v1603_v14  ;;  %v2562_v21 = vld [vmem:[#allocation23_spill] sm:$0xff]  ;;  %v1669_v15 = vmul.f32 %v1608_v8, %v1626_v40  ;;  %vm604_vm0 = vcmp.eq.f32.partialorder %v1603_v14, 0.0  ;;  %vm598_vm1 = vcmp.eq.f32.partialorder %v1610_v11, 0.0 }
  0xa8   : > { %vm596_vm2 = vcmp.eq.f32.partialorder %v1612_v19, 0.0  ;;  %vm602_vm3 = vcmp.eq.f32.partialorder %v1626_v40, 0.0  ;;  %vm600_vm4 = vcmp.eq.f32.partialorder %v1635_v56, 0.0 }
  0xa9   : > { %2565 = vst [vmem:[#allocation18_spill] sm:$0xff] %v1669_v15 }
  0xaa   : > { %v1536_v46 = vpop.permute.xlu1 %344 }
  0xab   : > { %v360_v47 = vmul.f32 %v1536_v46, %v1342_v22  ;;  %v354_v49 = vmul.f32 %v1536_v46, %v2554_v4  ;;  %v352_v9 = vmul.f32 %v1536_v46, %v2555_v10  ;;  %v358_v28 = vmul.f32 %v1536_v46, %v1354_v29  ;;  %v2561_v10 = vld [vmem:[#allocation22_spill] sm:$0xff] }
  0xac   : > { %v356_v25 = vmul.f32 %v1536_v46, %v1360_v32  ;;  %v364_v26 = vmul.f32 %v1536_v46, %v1362_v33  ;;  %v529_v22 = vmul.f32 %v2556_v48, %v1534_v41  ;;  %v1637_v4 = vadd.f32 %v531_v50, %v478_v59  ;;  %v510_v59 = vpop.permute.xlu0 %509  ;;  %v2560_v50 = vld [vmem:[#allocation21_spill] sm:$0xff] }
  0xad   : > { %v362_v29 = vmul.f32 %v1536_v46, %v1370_v37  ;;  %v1647_v32 = vmul.f32 %v1608_v8, %v1610_v11  ;;  %v1651_v33 = vmul.f32 %v1608_v8, %v1612_v19  ;;  %v392_v7 = vadd.f32 %v360_v47, %v2559_v39 }
  0xae   : > { %v386_v37 = vadd.f32 %v354_v49, %v2560_v50  ;;  %v384_v61 = vadd.f32 %v352_v9, %v2561_v10  ;;  %v390_v36 = vadd.f32 %v358_v28, %v2562_v21  ;;  %v388_v54 = vadd.f32 %v356_v25, %v2563_v63  ;;  %v2567_v49 = vld [vmem:[#allocation28_spill] sm:$0xff]  ;;  %v2575_v50 = vld [vmem:[#allocation7_spill] sm:$0xff]  ;;  %v2576_v10 = vld [vmem:[#allocation6_spill] sm:$0xff] }
  0xaf   : > { %v396_v51 = vadd.f32 %v364_v26, %v2564_v42  ;;  %v1663_v38 = vadd.f32 %v529_v22, %v1501_v58  ;;  %v1673_v47 = vmul.f32 %v1608_v8, %v1635_v56  ;;  %v394_v21 = vadd.f32 %v362_v29, %v2567_v49 }
  0xb0   : > { %v262_v63 = vmul.f32 %v1358_v31, %v1567_v18  ;;  %v520_v42 = vmul.f32 %v2543_v12, %v510_v59  ;;  %v1681_v58 = vmul.f32 %v1608_v8, %v1637_v4  ;;  %v1684_v16 = vmul.f32 %v1403_v57, %v510_v59 }
  0xb1   : > { %2566 = vst [vmem:[#allocation3_spill] sm:$0xff] %v1673_v47  ;;  %v264_v9 = vmul.f32 %v1356_v30, %v1567_v18  ;;  %v1691_v25 = vadd.f32 %v1526_v20, %v392_v7  ;;  %v1694_v26 = vadd.f32 %v1530_v13, %v386_v37  ;;  %v1697_v31 = vadd.f32 %v1544_v2, %v384_v61 }
  0xb2   : > { %2568 = vst [vmem:[#allocation4_spill] sm:$0xff] %v1681_v58  ;;  %v1688_v28 = vpop.permute.xlu2 %546  ;;  %v1700_v22 = vadd.f32 %v1548_v3, %v390_v36  ;;  %v1703_v29 = vadd.f32 %v1552_v17, %v388_v54  ;;  %v1706_v39 = vadd.f32 %v1560_v6, %v396_v51  ;;  %v1710_v30 = vmul.f32 %v1608_v8, %v1663_v38  ;;  %v2572_v17 = vld [vmem:[#allocation31_spill] sm:$0xff] }
  0xb3   : > { %2569 = vst [vmem:[#allocation19_spill] sm:$0xff] %v1688_v28  ;;  %v377_v20 = vadd.f32 %v1496_v23, %v266_v27  ;;  %v1716_v2 = vadd.f32 %v1564_v0, %v394_v21  ;;  %v528_v36 = vmul.f32 %v1395_v52, %v510_v59  ;;  %v373_v3 = vadd.f32 %v1505_v43, %v262_v63  ;;  %v2578_v21 = vld [vmem:[#allocation5_spill] sm:$0xff] }
  0xb4   : > { %2570 = vst [vmem:[#allocation24_spill] sm:$0xff] %v1710_v30  ;;  %v1721_v54 = vmul.f32 %v2551_v44, %v510_v59  ;;  %v549_v6 = vmul.f32 %v1688_v28, %v2543_v12  ;;  %v1729_v23 = vmul.f32 %v1688_v28, %v1403_v57  ;;  %v375_v0 = vadd.f32 %v2572_v17, %v264_v9  ;;  %v2579_v9 = vld [vmem:[#allocation14_spill] sm:$0xff] }
  0xb5   : > { %v1734_v7 = vmul.f32 %v1688_v28, %v1395_v52  ;;  %v1738_v43 = vmul.f32 %v1688_v28, %v2551_v44  ;;  %v272_v37 = vmul.f32 %v2575_v50, %v1567_v18  ;;  %v268_v61 = vmul.f32 %v2576_v10, %v1567_v18  ;;  %v2581_v50 = vld [vmem:[#allocation29_spill] sm:$0xff] }
  0xb6   : > { %2571 = vst [vmem:[#allocation27_spill] sm:$0xff] %v1721_v54  ;;  %v1747_v49 = vmul.f32 %v2548_v55, %v510_v59  ;;  %v270_v63 = vmul.f32 %v2578_v21, %v1567_v18  ;;  %v366_v17 = vmul.f32 %v1536_v46, %v2579_v9  ;;  %v1755_v30 = vmul.f32 %v1688_v28, %v2548_v55  ;;  %v2584_v46 = vld [vmem:[#allocation9_spill] sm:$0xff]  ;;  %v2585_v9 = vld [vmem:[#allocation8_spill] sm:$0xff]  ;;  %v2595_v54 = vld [vmem:[#allocation34_spill] sm:$0xff] }
  0xb7   : > { %2573 = vst [vmem:[#allocation20_spill] sm:$0xff] %v1734_v7  ;;  %v1758_v58 = vmul.f32 %v2581_v50, %v510_v59  ;;  %v1762_v10 = vmul.f32 %v1688_v28, %v2581_v50  ;;  %v1784_v47 = vmul.f32 %v1688_v28, %v2556_v48  ;;  %v2602_v28 = vld [vmem:[#allocation12_spill] sm:$0xff]  ;;  %vm608_vm7 = vcmp.eq.f32.partialorder %v1637_v4, 0.0 }
  0xb8   : > { %2574 = vst [vmem:[#allocation21_spill] sm:$0xff] %v1738_v43  ;;  %vm606_vm8 = vcmp.eq.f32.partialorder %v1663_v38, 0.0 }
  0xb9   : > { %2577 = vst [vmem:[#allocation22_spill] sm:$0xff] %v1747_v49  ;;  %v2594_v49 = vld [vmem:[#allocation11_spill] sm:$0xff] }
  0xba   : > { %v1616_v24 = vpop.permute.xlu1 %411  ;;  %2580 = vst [vmem:[#allocation23_spill] sm:$0xff] %v1755_v30  ;;  %v1774_v30 = vmul.f32 %v2556_v48, %v510_v59 }
  0xbb   : > { %v422_v51 = vmul.f32 %v1384_v45, %v1616_v24  ;;  %2582 = vst [vmem:[#allocation25_spill] sm:$0xff] %v1758_v58  ;;  %v424_v21 = vmul.f32 %v2584_v46, %v1616_v24  ;;  %v430_v58 = vmul.f32 %v2585_v9, %v1616_v24 }
  0xbc   : > { %2583 = vst [vmem:[#allocation26_spill] sm:$0xff] %v1762_v10  ;;  %v2587_v10 = vld [vmem:[#allocation32_spill] sm:$0xff] }
  0xbd   : > { %v467_v18 = vadd.f32 %v422_v51, %v369_v53  ;;  %2586 = vst [vmem:[#allocation28_spill] sm:$0xff] %v1774_v30  ;;  %v1777_v43 = vadd.f32 %v2587_v10, %v272_v37  ;;  %v1787_v53 = vmul.f32 %v2552_v62, %v510_v59  ;;  %v2593_v51 = vld [vmem:[#allocation35_spill] sm:$0xff]  ;;  %v426_v30 = vmul.f32 %v2594_v49, %v1616_v24  ;;  %v2597_v10 = vld [vmem:[#allocation30_spill] sm:$0xff] }
  0xbe   : > { %2591 = vst [vmem:[#allocation6_spill] sm:$0xff] %v1784_v47  ;;  %v1794_v37 = vadd.f32 %v2595_v54, %v270_v63  ;;  %v1804_v59 = vmul.f32 %v1426_v5, %v1616_v24 }
  0xbf   : > { %2588 = vst [vmem:[#allocation31_spill] sm:$0xff] %v1777_v43  ;;  %v565_v63 = vadd.f32 %v520_v42, %v467_v18  ;;  %v471_v42 = vadd.f32 %v426_v30, %v373_v3 }
  0xc0   : > { %2592 = vst [vmem:[#allocation5_spill] sm:$0xff] %v1787_v53 }
  0xc1   : > { %2596 = vst [vmem:[#allocation14_spill] sm:$0xff] %v1794_v37  ;;  %v1816_v37 = vmul.f32 %v2602_v28, %v1616_v24  ;;  %vm597_vm6 = vcmp.eq.f32.partialorder %v565_v63, 0.0  ;;  %v649_v40 = vmul.f32 %v1608_v8, %v565_v63  ;;  %v2604_v63 = vld [vmem:[#allocation15_spill] sm:$0xff] }
  0xc2   : > { %v1713_v13 = vpop.permute.xlu1 %448  ;;  %2599 = vst [vmem:[#allocation29_spill] sm:$0xff] %v1804_v59 }
  0xc3   : > { %v451_v27 = vmul.f32 %v1713_v13, %v1384_v45  ;;  %v533_v45 = vmul.f32 %v2581_v50, %v1534_v41  ;;  %v2589_v41 = vld [vmem:[#allocation33_spill] sm:$0xff] }
  0xc4   : > { %v1780_v7 = vadd.f32 %v2589_v41, %v268_v61  ;;  %v1797_v61 = vadd.f32 %v366_v17, %v2597_v10  ;;  %v2598_v41 = vld [vmem:[#allocation10_spill] sm:$0xff]  ;;  %v469_v17 = vadd.f32 %v424_v21, %v1654_v60  ;;  %v475_v10 = vadd.f32 %v430_v58, %v377_v20 }
  0xc5   : > { %v483_v15 = vadd.f32 %v451_v27, %v2593_v51  ;;  %v428_v47 = vmul.f32 %v2598_v41, %v1616_v24  ;;  %v2600_v27 = vld [vmem:[#allocation13_spill] sm:$0xff]  ;;  %v1811_v53 = vadd.f32 %v533_v45, %v1593_v34  ;;  %v453_v60 = vmul.f32 %v1713_v13, %v2584_v46 }
  0xc6   : > { %2590 = vst [vmem:[#allocation7_spill] sm:$0xff] %v1780_v7  ;;  %v1808_v51 = vmul.f32 %v2600_v27, %v1616_v24  ;;  %v457_v21 = vmul.f32 %v1713_v13, %v2598_v41 }
  0xc7   : > { %v581_v34 = vadd.f32 %v549_v6, %v483_v15  ;;  %v473_v15 = vadd.f32 %v428_v47, %v375_v0  ;;  %v485_v11 = vadd.f32 %v453_v60, %v1575_v1  ;;  %v455_v1 = vmul.f32 %v1713_v13, %v2594_v49 }
  0xc8   : > { %2601 = vst [vmem:[#allocation9_spill] sm:$0xff] %v1808_v51  ;;  %vm610_vm10 = vcmp.eq.f32.partialorder %v1811_v53, 0.0  ;;  %v662_v4 = vmul.f32 %v1608_v8, %v1811_v53 }
  0xc9   : > { %v613_v30 = vsel %vm597_vm6, 0.0, %v581_v34  ;;  %v583_v46 = vadd.f32 %v1729_v23, %v485_v11  ;;  %v2607_v23 = vld [vmem:[#allocation22_spill] sm:$0xff] }
  0xca   : > { %v1886_v60 = vadd.f32 %v2607_v23, %v473_v15  ;;  %v465_v15 = vmul.f32 %v1713_v13, %v1426_v5  ;;  %v2626_v23 = vld [vmem:[#allocation28_spill] sm:$0xff] }
  0xcc   : > { %vm603_vm13 = vcmp.eq.f32.partialorder %v1886_v60, 0.0 }
  0xd2   : > { %v541_v54 = vpop.permute.xlu1 %540 }
  0xd3   : > { %v556_v7 = vmul.f32 %v541_v54, %v1395_v52  ;;  %v550_v59 = vmul.f32 %v541_v54, %v1403_v57  ;;  %v548_v43 = vmul.f32 %v541_v54, %v2543_v12  ;;  %v554_v51 = vmul.f32 %v541_v54, %v2548_v55  ;;  %v1832_v57 = vld [vmem:[%s2481_s3] ss:$0 sm:$0xff] }
  0xd4   : > { %v552_v45 = vmul.f32 %v541_v54, %v2551_v44  ;;  %v1836_v12 = vadd.f32 %v1684_v16, %v469_v17  ;;  %v1838_v44 = vadd.f32 %v528_v36, %v475_v10  ;;  %v560_v47 = vmul.f32 %v541_v54, %v2552_v62  ;;  %v2605_v10 = vld [vmem:[#allocation36_spill] sm:$0xff] }
  0xd5   : > { %v588_v58 = vadd.f32 %v556_v7, %v1691_v25  ;;  %v582_v24 = vadd.f32 %v550_v59, %v1694_v26  ;;  %v580_v52 = vadd.f32 %v548_v43, %v1697_v31  ;;  %v586_v20 = vadd.f32 %v554_v51, %v1700_v22 }
  0xd6   : > { %v584_v55 = vadd.f32 %v552_v45, %v1703_v29  ;;  %v558_v19 = vmul.f32 %v541_v54, %v2556_v48  ;;  %v632_v7 = vmul.f32 %v1832_v57, %v613_v30  ;;  %v459_v43 = vmul.f32 %v1713_v13, %v2585_v9  ;;  %v2603_v9 = vld [vmem:[#allocation39_spill] sm:$0xff] }
  0xd7   : > { %v620_v25 = vsel %vm604_vm0, 0.0, %v588_v58  ;;  %v614_v26 = vsel %vm598_vm1, 0.0, %v582_v24  ;;  %v612_v31 = vsel %vm596_vm2, 0.0, %v580_v52  ;;  %v618_v14 = vsel %vm602_vm3, 0.0, %v586_v20  ;;  %v2608_v58 = vld [vmem:[#allocation18_spill] sm:$0xff]  ;;  %v2609_v52 = vld [vmem:[#allocation3_spill] sm:$0xff] }
  0xd8   : > { %v639_v22 = vmul.f32 %v1832_v57, %v620_v25  ;;  %v633_v29 = vmul.f32 %v1832_v57, %v614_v26  ;;  %v631_v16 = vmul.f32 %v1832_v57, %v612_v31  ;;  %v616_v0 = vsel %vm600_vm4, 0.0, %v584_v55  ;;  %v2610_v20 = vld [vmem:[#allocation37_spill] sm:$0xff]  ;;  %v2611_v26 = vld [vmem:[#allocation20_spill] sm:$0xff] }
  0xd9   : > { %v635_v56 = vmul.f32 %v1832_v57, %v616_v0  ;;  %v592_v18 = vadd.f32 %v560_v47, %v1706_v39  ;;  %v590_v49 = vadd.f32 %v558_v19, %v1716_v2  ;;  %v496_v59 = vadd.f32 %v2603_v9, %v1797_v61  ;;  %v2606_v39 = vld [vmem:[#allocation27_spill] sm:$0xff]  ;;  %v2622_v9 = vld [vmem:[#allocation16_spill] sm:$0xff] }
  0xda   : > { %v672_v36 = vadd.f32 %v1643_v35, %v639_v22  ;;  %v666_v3 = vadd.f32 %v1647_v32, %v633_v29  ;;  %v664_v6 = vadd.f32 %v1651_v33, %v631_v16  ;;  %v637_v33 = vmul.f32 %v1832_v57, %v618_v14  ;;  %v2612_v22 = vld [vmem:[#allocation21_spill] sm:$0xff]  ;;  %v2614_v0 = vld [vmem:[#allocation31_spill] sm:$0xff] }
  0xdb   : > { %v562_v51 = vmul.f32 %v541_v54, %v2581_v50  ;;  %v491_v17 = vadd.f32 %v459_v43, %v2604_v63  ;;  %v487_v34 = vadd.f32 %v455_v1, %v2605_v10  ;;  %v1883_v45 = vadd.f32 %v2606_v39, %v471_v42  ;;  %v2616_v1 = vld [vmem:[#allocation7_spill] sm:$0xff]  ;;  %v2623_v63 = vld [vmem:[#allocation17_spill] sm:$0xff] }
  0xdc   : > { %v705_v48 = vsel %vm680_vm5, %v672_v36, 0.0  ;;  %v687_v35 = vsel %vm680_vm5, %v666_v3, 0.0  ;;  %v681_v32 = vsel %vm680_vm5, %v664_v6, 0.0  ;;  %v670_v2 = vadd.f32 %v2608_v58, %v637_v33  ;;  %v2613_v3 = vld [vmem:[#allocation23_spill] sm:$0xff]  ;;  %v2619_v33 = vld [vmem:[#allocation4_spill] sm:$0xff] }
  0xdd   : > { %706 = vadd.xlane.f32.xlu2 %v705_v48  ;;  %688 = vadd.xlane.f32.xlu0 %v687_v35  ;;  %v665_v24 = vadd.f32 %v649_v40, %v632_v7  ;;  %vm599_vm9 = vcmp.eq.f32.partialorder %v1836_v12, 0.0  ;;  %v594_v41 = vadd.f32 %v562_v51, %v496_v59  ;;  %v668_v61 = vadd.f32 %v2609_v52, %v635_v56  ;;  %v2615_v7 = vld [vmem:[#allocation29_spill] sm:$0xff]  ;;  %v2618_v35 = vld [vmem:[#allocation14_spill] sm:$0xff]  ;;  %v2624_v10 = vld [vmem:[#allocation19_spill] sm:$0xff] }
  0xde   : > { %682 = vadd.xlane.f32.xlu1 %v681_v32  ;;  %v624_v50 = vsel %vm608_vm7, 0.0, %v592_v18  ;;  %v615_v54 = vsel %vm599_vm9, 0.0, %v583_v46  ;;  %v622_v42 = vsel %vm606_vm8, 0.0, %v590_v49  ;;  %v489_v55 = vadd.f32 %v457_v21, %v2610_v20  ;;  %v2620_v18 = vld [vmem:[#allocation38_spill] sm:$0xff]  ;;  %v2621_v49 = vld [vmem:[#allocation24_spill] sm:$0xff] }
  0xdf   : > { %v626_v25 = vsel %vm610_vm10, 0.0, %v594_v41  ;;  %v589_v31 = vadd.f32 %v2611_v26, %v491_v17  ;;  %v585_v29 = vadd.f32 %v2612_v22, %v487_v34  ;;  %v699_v30 = vsel %vm680_vm5, %v670_v2, 0.0  ;;  %v2627_v2 = vld [vmem:[#allocation5_spill] sm:$0xff] }
  0xe0   : > { %v645_v16 = vmul.f32 %v1832_v57, %v626_v25  ;;  %v684_v38 = vsel %vm680_vm5, %v665_v24, 0.0  ;;  %v643_v14 = vmul.f32 %v1832_v57, %v624_v50  ;;  %v634_v47 = vmul.f32 %v1832_v57, %v615_v54 }
  0xe1   : > { %v693_v5 = vsel %vm680_vm5, %v668_v61, 0.0  ;;  %v641_v11 = vmul.f32 %v1832_v57, %v622_v42  ;;  %v461_v19 = vmul.f32 %v1713_v13, %v2600_v27  ;;  %v651_v53 = vmul.f32 %v1608_v8, %v1836_v12  ;;  %v2617_v27 = vld [vmem:[#allocation9_spill] sm:$0xff]  ;;  %v2628_v42 = vld [vmem:[#allocation26_spill] sm:$0xff] }
  0xe2   : > { %v1912_v36 = vadd.f32 %v662_v4, %v645_v16  ;;  %v587_v6 = vadd.f32 %v2613_v3, %v489_v55  ;;  %v481_v40 = vadd.f32 %v2615_v7, %v2614_v0  ;;  %v463_v43 = vmul.f32 %v1713_v13, %v2602_v28  ;;  %v2629_v55 = vld [vmem:[#allocation6_spill] sm:$0xff] }
  0xe3   : > { %vm605_vm11 = vcmp.eq.f32.partialorder %v1838_v44, 0.0  ;;  %vm601_vm12 = vcmp.eq.f32.partialorder %v1883_v45, 0.0  ;;  %v477_v48 = vadd.f32 %v2617_v27, %v2616_v1  ;;  %v479_v32 = vadd.f32 %v1816_v37, %v2618_v35  ;;  %v2625_v37 = vld [vmem:[#allocation25_spill] sm:$0xff] }
  0xe4   : > { %v676_v12 = vadd.f32 %v2619_v33, %v643_v14  ;;  %v667_v56 = vadd.f32 %v651_v53, %v634_v47  ;;  %v497_v46 = vadd.f32 %v465_v15, %v2620_v18  ;;  %v674_v21 = vadd.f32 %v2621_v49, %v641_v11 }
  0xe5   : > { %700 = vadd.xlane.f32.xlu0 %v699_v30  ;;  %685 = vadd.xlane.f32.xlu2 %v684_v38  ;;  %v621_v28 = vsel %vm605_vm11, 0.0, %v589_v31  ;;  %v617_v13 = vsel %vm601_vm12, 0.0, %v585_v29  ;;  %v493_v59 = vadd.f32 %v461_v19, %v2622_v9  ;;  %v619_v51 = vsel %vm603_vm13, 0.0, %v587_v6 }
  0xe6   : > { %694 = vadd.xlane.f32.xlu1 %v693_v5  ;;  %v495_v17 = vadd.f32 %v463_v43, %v2623_v63  ;;  %v561_v34 = vmul.f32 %v2624_v10, %v2552_v62  ;;  %v579_v39 = vadd.f32 %v2625_v37, %v481_v40  ;;  %v575_v58 = vadd.f32 %v2626_v23, %v477_v48 }
  0xe7   : > { %v577_v24 = vadd.f32 %v2627_v2, %v479_v32  ;;  %v717_v41 = vsel %vm680_vm5, %v676_v12, 0.0  ;;  %v690_v52 = vsel %vm680_vm5, %v667_v56, 0.0  ;;  %v640_v61 = vmul.f32 %v1832_v57, %v621_v28 }
  0xe8   : > { %v636_v50 = vmul.f32 %v1832_v57, %v617_v13  ;;  %v711_v54 = vsel %vm680_vm5, %v674_v21, 0.0  ;;  %v638_v62 = vmul.f32 %v1832_v57, %v619_v51  ;;  %v595_v20 = vadd.f32 %v2628_v42, %v497_v46 }
  0xe9   : > { %v591_v15 = vadd.f32 %v2629_v55, %v493_v59  ;;  %v657_v25 = vmul.f32 %v1608_v8, %v1838_v44  ;;  %v653_v26 = vmul.f32 %v1608_v8, %v1883_v45  ;;  %v593_v31 = vadd.f32 %v561_v34, %v495_v17 }
  0xea   : > { %v655_v22 = vmul.f32 %v1608_v8, %v1886_v60  ;;  %vm611_vm14 = vcmp.eq.f32.partialorder %v579_v39, 0.0  ;;  %vm607_vm15 = vcmp.eq.f32.partialorder %v575_v58, 0.0  ;;  %vm609_vm0 = vcmp.eq.f32.partialorder %v577_v24, 0.0 }
  0xeb   : > { %v673_v29 = vadd.f32 %v657_v25, %v640_v61  ;;  %v669_v16 = vadd.f32 %v653_v26, %v636_v50  ;;  %v627_v30 = vsel %vm611_vm14, 0.0, %v595_v20  ;;  %v623_v38 = vsel %vm607_vm15, 0.0, %v591_v15 }
  0xec   : > { %v671_v4 = vadd.f32 %v655_v22, %v638_v62  ;;  %v625_v14 = vsel %vm609_vm0, 0.0, %v593_v31  ;;  %v646_v5 = vmul.f32 %v1832_v57, %v627_v30  ;;  %v642_v45 = vmul.f32 %v1832_v57, %v623_v38 }
  0xed   : > { %718 = vadd.xlane.f32.xlu0 %v717_v41  ;;  %691 = vadd.xlane.f32.xlu2 %v690_v52  ;;  %v708_v47 = vsel %vm680_vm5, %v673_v29, 0.0  ;;  %v696_v44 = vsel %vm680_vm5, %v669_v16, 0.0  ;;  %v644_v11 = vmul.f32 %v1832_v57, %v625_v14  ;;  %v663_v19 = vmul.f32 %v1608_v8, %v579_v39 }
  0xee   : > { %712 = vadd.xlane.f32.xlu1 %v711_v54  ;;  %v702_v60 = vsel %vm680_vm5, %v671_v4, 0.0  ;;  %v659_v53 = vmul.f32 %v1608_v8, %v575_v58  ;;  %v661_v3 = vmul.f32 %v1608_v8, %v577_v24  ;;  %v723_v57 = vsel %vm680_vm5, %v1912_v36, 0.0 }
  0xef   : > { %v679_v6 = vadd.f32 %v663_v19, %v646_v5  ;;  %v1966_v27 = vstv %s729_s9  ;;  %v2630_v14 = vlaneseq }
  0xf0   : > { %v675_v0 = vadd.f32 %v659_v53, %v642_v45  ;;  %v677_v7 = vadd.f32 %v661_v3, %v644_v11 }
  0xf1   : > { %v726_v40 = vsel %vm680_vm5, %v679_v6, 0.0 }
  0xf2   : > { %v714_v43 = vsel %vm680_vm5, %v675_v0, 0.0  ;;  %v720_v1 = vsel %vm680_vm5, %v677_v7, 0.0 }
  0xf5   : > { %709 = vadd.xlane.f32.xlu0 %v708_v47  ;;  %697 = vadd.xlane.f32.xlu2 %v696_v44  ;;  %v2003_v47 = vand.u32 127, %v2630_v14 }
  0xf6   : > { %703 = vadd.xlane.f32.xlu1 %v702_v60 }
  0xf7   : > { %v2014_v19 = vadd.s32 4294967288, %v2003_v47 }
  0xfd   : > { %727 = vadd.xlane.f32.xlu0 %v726_v40  ;;  %715 = vadd.xlane.f32.xlu2 %v714_v43 }
  0xfe   : > { %721 = vadd.xlane.f32.xlu1 %v720_v1 }
 0x105   : > { %724 = vadd.xlane.f32.xlu2 %v723_v57 }
 0x150   : > { %v707_v8 = vpop.xlane.xlu2 %706  ;;  %v689_v48 = vpop.xlane.xlu0 %688 }
 0x151   : > { %v739_v35 = vadd.f32 %v1966_v27, %v707_v8  ;;  %v733_v33 = vadd.f32 %v1966_v27, %v689_v48  ;;  %v683_v12 = vpop.xlane.xlu1 %682 }
 0x152   : > { %v731_v46 = vadd.f32 %v1966_v27, %v683_v12 }
 0x153   : > { %v1181_v32 = vmul.f32 -1.442695, %v739_v35  ;;  %v1175_v18 = vmul.f32 -1.442695, %v733_v33 }
 0x154   : > { %v1173_v28 = vmul.f32 -1.442695, %v731_v46 }
 0x155   : > { %1212 = vpow2.f32 %v1181_v32 }
 0x156   : > { %1214 = vpow2.f32 %v1175_v18 }
 0x157   : > { %1216 = vpow2.f32 %v1173_v28 }
 0x158   : > { %v701_v56 = vpop.xlane.xlu0 %700  ;;  %v686_v49 = vpop.xlane.xlu2 %685 }
 0x159   : > { %v737_v36 = vadd.f32 %v1966_v27, %v701_v56  ;;  %v732_v21 = vadd.f32 %v1966_v27, %v686_v49  ;;  %v695_v51 = vpop.xlane.xlu1 %694 }
 0x15a   : > { %v735_v34 = vadd.f32 %v1966_v27, %v695_v51 }
 0x15b   : > { %v1179_v13 = vmul.f32 -1.442695, %v737_v36  ;;  %v1213_v9 = vpop.eup %1212  ;;  %v1174_v59 = vmul.f32 -1.442695, %v732_v21 }
 0x15c   : > { %v1973_v63 = vadd.f32 1.0, %v1213_v9  ;;  %v1215_v10 = vpop.eup %1214  ;;  %v1177_v58 = vmul.f32 -1.442695, %v735_v34 }
 0x15d   : > { %1218 = vpow2.f32 %v1179_v13  ;;  %v1978_v39 = vadd.f32 1.0, %v1215_v10  ;;  %v1217_v23 = vpop.eup %1216 }
 0x15e   : > { %1220 = vpow2.f32 %v1174_v59  ;;  %v1981_v61 = vadd.f32 1.0, %v1217_v23  ;;  %vm936_vm1 = vweird.f32 %v1973_v63  ;;  %v940_v11 = vand.u32 2147483647, %v1973_v63 }
 0x15f   : > { %1222 = vrcp.f32 %v1973_v63  ;;  %v942_v7 = vand.u32 2147483648, %v1973_v63  ;;  %vm846_vm2 = vweird.f32 %v1978_v39  ;;  %v850_v35 = vand.u32 2147483647, %v1978_v39 }
 0x160   : > { %v719_v17 = vpop.xlane.xlu0 %718  ;;  %v692_v2 = vpop.xlane.xlu2 %691  ;;  %1224 = vrcp.f32 %v1978_v39  ;;  %v852_v32 = vand.u32 2147483648, %v1978_v39  ;;  %vm2031_vm3 = vcmp.eq.f32.partialorder %v940_v11, 8.507059e+37  ;;  %v822_v59 = vand.u32 2147483648, %v1981_v61 }
 0x161   : > { %v743_v37 = vadd.f32 %v1966_v27, %v719_v17  ;;  %v734_v50 = vadd.f32 %v1966_v27, %v692_v2  ;;  %1226 = vpow2.f32 %v1177_v58  ;;  %v713_v42 = vpop.xlane.xlu1 %712  ;;  %v943_v49 = vor.u32 1.1754944e-38, %v942_v7 }
 0x162   : > { %v741_v30 = vadd.f32 %v1966_v27, %v713_v42  ;;  %v853_v9 = vor.u32 1.1754944e-38, %v852_v32  ;;  %vm2046_vm5 = vcmp.eq.f32.partialorder %v850_v35, 8.507059e+37  ;;  %vm816_vm6 = vweird.f32 %v1981_v61 }
 0x163   : > { %v1219_v24 = vpop.eup %1218  ;;  %v1185_v41 = vmul.f32 -1.442695, %v743_v37  ;;  %v1176_v55 = vmul.f32 -1.442695, %v734_v50  ;;  %v820_v34 = vand.u32 2147483647, %v1981_v61 }
 0x164   : > { %v1221_v52 = vpop.eup %1220  ;;  %v1984_v54 = vadd.f32 1.0, %v1219_v24  ;;  %v1183_v43 = vmul.f32 -1.442695, %v741_v30 }
 0x165   : > { %v1986_v62 = vpop.eup %1222  ;;  %v1988_v20 = vadd.f32 1.0, %v1221_v52  ;;  %1228 = vpow2.f32 %v1185_v41  ;;  %vm2084_vm12 = vcmp.eq.f32.partialorder %v820_v34, 8.507059e+37 }
 0x166   : > { %1230 = vrcp.f32 %v1981_v61  ;;  %v932_v15 = vmul.f32 %v1986_v62, %v1973_v63  ;;  %v1994_v25 = vpop.eup %1224  ;;  %vm937_vm4 = vweird.f32 %v1986_v62  ;;  %v912_v37 = vand.u32 2147483648, %v1984_v54 }
 0x167   : > { %1232 = vrcp.f32 %v1984_v54  ;;  %v1227_v26 = vpop.eup %1226  ;;  %v842_v4 = vmul.f32 %v1994_v25, %v1978_v39  ;;  %vm2058_vm7 = vmor %vm936_vm1, %vm937_vm4  ;;  %vm847_vm8 = vweird.f32 %v1994_v25  ;;  %v910_v41 = vand.u32 2147483647, %v1984_v54 }
 0x168   : > { %1234 = vrcp.f32 %v1988_v20  ;;  %v710_v31 = vpop.xlane.xlu0 %709  ;;  %v698_v22 = vpop.xlane.xlu2 %697  ;;  %v933_v16 = vsub.f32 1.0, %v932_v15  ;;  %v2005_v44 = vadd.f32 1.0, %v1227_v26  ;;  %v823_v26 = vor.u32 1.1754944e-38, %v822_v59  ;;  %vm2079_vm10 = vmor %vm846_vm2, %vm847_vm8 }
 0x169   : > { %1236 = vpow2.f32 %v1176_v55  ;;  %v740_v45 = vadd.f32 %v1966_v27, %v710_v31  ;;  %v736_v60 = vadd.f32 %v1966_v27, %v698_v22  ;;  %v704_v3 = vpop.xlane.xlu1 %703  ;;  %v843_v40 = vsub.f32 1.0, %v842_v4 }
 0x16a   : > { %v934_v0 = vmul.f32 %v1986_v62, %v933_v16  ;;  %1238 = vrcp.f32 %v2005_v44  ;;  %v738_v12 = vadd.f32 %v1966_v27, %v704_v3  ;;  %v835_v55 = vand.u32 2147483647, %v1988_v20 }
 0x16b   : > { %v1229_v29 = vpop.eup %1228  ;;  %v1178_v48 = vmul.f32 -1.442695, %v736_v60  ;;  %v1182_v33 = vmul.f32 -1.442695, %v740_v45  ;;  %v844_v36 = vmul.f32 %v1994_v25, %v843_v40  ;;  %vm906_vm9 = vweird.f32 %v1984_v54 }
 0x16c   : > { %v2000_v38 = vpop.eup %1230  ;;  %v2016_v53 = vadd.f32 1.0, %v1229_v29  ;;  %v935_v21 = vadd.f32 %v1986_v62, %v934_v0  ;;  %v1180_v51 = vmul.f32 -1.442695, %v738_v12  ;;  %v913_v4 = vor.u32 1.1754944e-38, %v912_v37 }
 0x16d   : > { %v2007_v5 = vpop.eup %1232  ;;  %v812_v57 = vmul.f32 %v2000_v38, %v1981_v61  ;;  %v845_v24 = vadd.f32 %v1994_v25, %v844_v36  ;;  %vm817_vm11 = vweird.f32 %v2000_v38  ;;  %v837_v14 = vand.u32 2147483648, %v1988_v20 }
 0x16e   : > { %v2018_v6 = vpop.eup %1234  ;;  %v902_v8 = vmul.f32 %v2007_v5, %v1984_v54  ;;  %1240 = vrcp.f32 %v2016_v53  ;;  %v939_v50 = vsel %vm2058_vm7, %v1986_v62, %v935_v21  ;;  %vm907_vm13 = vweird.f32 %v2007_v5  ;;  %vm2130_vm2 = vmor %vm816_vm6, %vm817_vm11 }
 0x16f   : > { %v1237_v1 = vpop.eup %1236  ;;  %v827_v18 = vmul.f32 %v2018_v6, %v1988_v20  ;;  %1242 = vpow2.f32 %v1183_v43  ;;  %v813_v28 = vsub.f32 1.0, %v812_v57  ;;  %v2092_v39 = vsel %vm2031_vm3, %v943_v49, %v939_v50  ;;  %vm2144_vm3 = vmor %vm906_vm9, %vm907_vm13 }
 0x170   : > { %v2038_v46 = vadd.f32 1.0, %v1237_v1  ;;  %v903_v13 = vsub.f32 1.0, %v902_v8  ;;  %1244 = vpow2.f32 %v1178_v48  ;;  %v2044_v17 = vpop.eup %1238  ;;  %v728_v58 = vpop.xlane.xlu0 %727  ;;  %v849_v11 = vsel %vm2079_vm10, %v1994_v25, %v845_v24 }
 0x171   : > { %1246 = vpow2.f32 %v1182_v33  ;;  %v828_v23 = vsub.f32 1.0, %v827_v18  ;;  %v814_v42 = vmul.f32 %v2000_v38, %v813_v28  ;;  %v872_v31 = vmul.f32 %v2044_v17, %v2005_v44  ;;  %v716_v45 = vpop.xlane.xlu2 %715 }
 0x172   : > { %1248 = vrcp.f32 %v2038_v46  ;;  %v904_v63 = vmul.f32 %v2007_v5, %v903_v13  ;;  %v746_v22 = vadd.f32 %v1966_v27, %v728_v58  ;;  %vm2098_vm14 = vcmp.eq.f32.partialorder %v910_v41, 8.507059e+37 }
 0x173   : > { %1250 = vpow2.f32 %v1180_v51  ;;  %v829_v30 = vmul.f32 %v2018_v6, %v828_v23  ;;  %vm831_vm15 = vweird.f32 %v1988_v20  ;;  %v815_v7 = vadd.f32 %v2000_v38, %v814_v42 }
 0x174   : > { %v2065_v52 = vpop.eup %1240  ;;  %v905_v40 = vadd.f32 %v2007_v5, %v904_v63  ;;  %vm2107_vm0 = vcmp.eq.f32.partialorder %v835_v55, 8.507059e+37  ;;  %v873_v57 = vsub.f32 1.0, %v872_v31  ;;  %v1188_v48 = vmul.f32 -1.442695, %v746_v22 }
 0x175   : > { %v1243_v15 = vpop.eup %1242  ;;  %v742_v35 = vadd.f32 %v1966_v27, %v716_v45  ;;  %v830_v32 = vadd.f32 %v2018_v6, %v829_v30  ;;  %vm832_vm1 = vweird.f32 %v2018_v6  ;;  %v838_v33 = vor.u32 1.1754944e-38, %v837_v14 }
 0x176   : > { %v1245_v29 = vpop.eup %1244  ;;  %v2111_v1 = vadd.f32 1.0, %v1243_v15  ;;  %v1083_v56 = vperm.slane %v2092_v39, %v2003_v47  ;;  %v2124_v18 = vsel %vm2046_vm5, %v853_v9, %v849_v11  ;;  %v819_v21 = vsel %vm2130_vm2, %v2000_v38, %v815_v7  ;;  %v722_v9 = vpop.xlane.xlu1 %721  ;;  %vm2160_vm5 = vmor %vm831_vm15, %vm832_vm1 }
 0x177   : > { %v1247_v60 = vpop.eup %1246  ;;  %v2113_v8 = vadd.f32 1.0, %v1245_v29  ;;  %v992_v61 = vmul.f32 %v2065_v52, %v2016_v53  ;;  %v909_v38 = vsel %vm2144_vm3, %v2007_v5, %v905_v40  ;;  %vm1072_vm4 = vcmask 130112  }
 0x178   : > { %v2103_v0 = vpop.eup %1248  ;;  %v2151_v13 = vadd.f32 1.0, %v1247_v60  ;;  %v874_v59 = vmul.f32 %v2044_v17, %v873_v57  ;;  %v1184_v51 = vmul.f32 -1.442695, %v742_v35  ;;  %v834_v10 = vsel %vm2160_vm5, %v2018_v6, %v830_v32 }
 0x179   : > { %v1251_v25 = vpop.eup %1250  ;;  %v857_v36 = vmul.f32 %v2103_v0, %v2038_v46  ;;  %1252 = vrcp.f32 %v2113_v8  ;;  %v880_v34 = vand.u32 2147483647, %v2005_v44  ;;  %v882_v5 = vand.u32 2147483648, %v2005_v44  ;;  %v725_v57 = vpop.xlane.xlu2 %724 }
 0x17a   : > { %v2118_v12 = vadd.f32 1.0, %v1251_v25  ;;  %1254 = vrcp.f32 %v2111_v1  ;;  %v1074_v20 = vperm.slane %v2124_v18, %v2003_v47  ;;  %v824_v37 = vsel %vm2084_vm12, %v823_v26, %v819_v21 }
 0x17b   : > { %1256 = vpow2.f32 %v1188_v48  ;;  %v858_v23 = vsub.f32 1.0, %v857_v36  ;;  %v744_v58 = vadd.f32 %v1966_v27, %v722_v9  ;;  %v2178_v2 = vsel %vm2098_vm14, %v913_v4, %v909_v38 }
 0x17c   : > { %1258 = vrcp.f32 %v2118_v12  ;;  %v993_v6 = vsub.f32 1.0, %v992_v61  ;;  %v1002_v24 = vand.u32 2147483648, %v2016_v53  ;;  %v839_v50 = vsel %vm2107_vm0, %v838_v33, %v834_v10 }
 0x17d   : > { %1260 = vrcp.f32 %v2151_v13  ;;  %v875_v42 = vadd.f32 %v2044_v17, %v874_v59  ;;  %vm877_vm6 = vweird.f32 %v2044_v17  ;;  %v1069_v55 = vperm.slane %v824_v37, %v2003_v47 }
 0x17e   : > { %1262 = vpow2.f32 %v1184_v51  ;;  %vm876_vm7 = vweird.f32 %v2005_v44  ;;  %vm2192_vm8 = vcmp.eq.f32.partialorder %v880_v34, 8.507059e+37  ;;  %v883_v26 = vor.u32 1.1754944e-38, %v882_v5 }
 0x17f   : > { %v2182_v41 = vpop.eup %1252  ;;  %vm996_vm9 = vweird.f32 %v2016_v53  ;;  %v859_v22 = vmul.f32 %v2103_v0, %v858_v23  ;;  %v1186_v62 = vmul.f32 -1.442695, %v744_v58  ;;  %v1080_v4 = vperm.slane %v2178_v2, %v2003_v47  ;;  %vm2207_vm10 = vmor %vm876_vm7, %vm877_vm6 }
 0x180   : > { %v2188_v63 = vpop.eup %1254  ;;  %v887_v29 = vmul.f32 %v2182_v41, %v2113_v8  ;;  %v1071_v44 = vperm.slane %v839_v50, %v2014_v19  ;;  %v994_v14 = vmul.f32 %v2065_v52, %v993_v6  ;;  %v1000_v45 = vand.u32 2147483647, %v2016_v53 }
 0x181   : > { %v1257_v31 = vpop.eup %1256  ;;  %v879_v60 = vsel %vm2207_vm10, %v2044_v17, %v875_v42  ;;  %vm997_vm11 = vweird.f32 %v2065_v52  ;;  %v2217_v11 = vor.u32 1.1754944e-38, %v1002_v24  ;;  %v962_v3 = vmul.f32 %v2188_v63, %v2111_v1 }
 0x182   : > { %v2200_v16 = vpop.eup %1258  ;;  %vm862_vm12 = vweird.f32 %v2103_v0  ;;  %v865_v40 = vand.u32 2147483647, %v2038_v46  ;;  %v867_v43 = vand.u32 2147483648, %v2038_v46  ;;  %v2226_v25 = vadd.f32 1.0, %v1257_v31  ;;  %vm2263_vm0 = vmor %vm996_vm9, %vm997_vm11 }
 0x183   : > { %v2221_v7 = vpop.eup %1260  ;;  %v860_v17 = vadd.f32 %v2103_v0, %v859_v22  ;;  %v888_v35 = vsub.f32 1.0, %v887_v29  ;;  %v917_v32 = vmul.f32 %v2200_v16, %v2118_v12  ;;  %1264 = vpow2.f32 %v1186_v62 }
 0x184   : > { %v1263_v48 = vpop.eup %1262  ;;  %v2232_v33 = vsel %vm1072_vm4, %v1071_v44, %v1069_v55  ;;  %v2236_v49 = vsel %vm2192_vm8, %v883_v26, %v879_v60  ;;  %v2239_v36 = vadd.f32 %v2065_v52, %v994_v14  ;;  %vm861_vm13 = vweird.f32 %v2038_v46 }
 0x185   : > { %v963_v21 = vsub.f32 1.0, %v962_v3  ;;  %v972_v28 = vand.u32 2147483648, %v2111_v1  ;;  %v2243_v61 = vadd.f32 1.0, %v1263_v48  ;;  %v745_v9 = vadd.f32 %v1966_v27, %v725_v57  ;;  %vm2248_vm14 = vmor %vm861_vm13, %vm862_vm12 }
 0x186   : > { %vm2252_vm15 = vcmp.eq.f32.partialorder %v865_v40, 8.507059e+37  ;;  %v868_v59 = vor.u32 1.1754944e-38, %v867_v43  ;;  %v947_v46 = vmul.f32 %v2221_v7, %v2151_v13  ;;  %1266 = vrcp.f32 %v2226_v25 }
 0x187   : > { %v864_v51 = vsel %vm2248_vm14, %v2103_v0, %v860_v17  ;;  %v889_v10 = vmul.f32 %v2182_v41, %v888_v35  ;;  %v918_v34 = vsub.f32 1.0, %v917_v32  ;;  %1268 = vrcp.f32 %v2243_v61 }
 0x188   : > { %v1077_v5 = vperm.slane %v2236_v49, %v2003_v47  ;;  %v999_v37 = vsel %vm2263_vm0, %v2065_v52, %v2239_v36  ;;  %vm966_vm1 = vweird.f32 %v2111_v1  ;;  %v970_v23 = vand.u32 2147483647, %v2111_v1 }
 0x189   : > { %v1265_v58 = vpop.eup %1264  ;;  %v964_v0 = vmul.f32 %v2188_v63, %v963_v21  ;;  %v2281_v6 = vor.u32 1.1754944e-38, %v972_v28  ;;  %v955_v24 = vand.u32 2147483647, %v2151_v13  ;;  %v1187_v50 = vmul.f32 -1.442695, %v745_v9 }
 0x18a   : > { %vm1095_vm2 = vcmask 1041409   ;;  %v869_v42 = vsel %vm2252_vm15, %v868_v59, %v864_v51  ;;  %v948_v55 = vsub.f32 1.0, %v947_v46  ;;  %v957_v15 = vand.u32 2147483648, %v2151_v13 }
 0x18b   : > { %vm892_vm3 = vweird.f32 %v2182_v41  ;;  %v890_v26 = vadd.f32 %v2182_v41, %v889_v10  ;;  %v919_v31 = vmul.f32 %v2200_v16, %v918_v34  ;;  %v2290_v22 = vadd.f32 1.0, %v1265_v58 }
 0x18c   : > { %1270 = vpow2.f32 %v1187_v50  ;;  %v2292_v29 = vpop.eup %1266  ;;  %vm967_vm5 = vweird.f32 %v2188_v63  ;;  %vm951_vm6 = vweird.f32 %v2151_v13  ;;  %vm891_vm7 = vweird.f32 %v2113_v8 }
 0x18d   : > { %v895_v62 = vand.u32 2147483647, %v2113_v8  ;;  %v897_v44 = vand.u32 2147483648, %v2113_v8  ;;  %v2299_v30 = vpop.eup %1268  ;;  %v1075_v14 = vperm.slane %v869_v42, %v2014_v19  ;;  %v965_v60 = vadd.f32 %v2188_v63, %v964_v0  ;;  %vm2312_vm9 = vmor %vm891_vm7, %vm892_vm3 }
 0x18e   : > { %vm2303_vm8 = vcmp.eq.f32.partialorder %v970_v23, 8.507059e+37  ;;  %v925_v40 = vand.u32 2147483647, %v2118_v12  ;;  %1272 = vrcp.f32 %v2290_v22  ;;  %v949_v43 = vmul.f32 %v2221_v7, %v948_v55  ;;  %vm2330_vm11 = vmor %vm966_vm1, %vm967_vm5 }
 0x18f   : > { %v958_v57 = vor.u32 1.1754944e-38, %v957_v15  ;;  %v927_v48 = vand.u32 2147483648, %v2118_v12  ;;  %v977_v17 = vmul.f32 %v2299_v30, %v2243_v61  ;;  %v894_v35 = vsel %vm2312_vm9, %v2182_v41, %v890_v26 }
 0x190   : > { %v920_v32 = vadd.f32 %v2200_v16, %v919_v31  ;;  %vm922_vm10 = vweird.f32 %v2200_v16  ;;  %v1037_v21 = vmul.f32 %v2292_v29, %v2226_v25  ;;  %vm952_vm12 = vweird.f32 %v2221_v7 }
 0x191   : > { %v898_v9 = vor.u32 1.1754944e-38, %v897_v44  ;;  %vm921_vm13 = vweird.f32 %v2118_v12  ;;  %v978_v41 = vsub.f32 1.0, %v977_v17  ;;  %v1076_v54 = vsel %vm1072_vm4, %v1075_v14, %v1074_v20 }
 0x192   : > { %v1271_v38 = vpop.eup %1270  ;;  %v969_v1 = vsel %vm2330_vm11, %v2188_v63, %v965_v60  ;;  %vm2343_vm14 = vcmp.eq.f32.partialorder %v955_v24, 8.507059e+37  ;;  %vm1097_vm15 = vcmask 1042434   ;;  %vm896_vm1 = vcmp.eq.f32.partialorder %v895_v62, 8.507059e+37  ;;  %vm2353_vm5 = vmor %vm921_vm13, %vm922_vm10 }
 0x193   : > { %vm2347_vm3 = vcmp.eq.f32.partialorder %v925_v40, 8.507059e+37  ;;  %v899_v12 = vsel %vm896_vm1, %v898_v9, %v894_v35  ;;  %v928_v20 = vor.u32 1.1754944e-38, %v927_v48  ;;  %v979_v63 = vmul.f32 %v2299_v30, %v978_v41  ;;  %vm2381_vm10 = vmor %vm951_vm6, %vm952_vm12 }
 0x194   : > { %v2358_v51 = vadd.f32 1.0, %v1271_v38  ;;  %v1273_v10 = vpop.eup %1272  ;;  %v950_v34 = vadd.f32 %v2221_v7, %v949_v43  ;;  %v924_v23 = vsel %vm2353_vm5, %v2200_v16, %v920_v32  ;;  %v1038_v58 = vsub.f32 1.0, %v1037_v21 }
 0x195   : > { %vm982_vm7 = vweird.f32 %v2299_v30  ;;  %v980_v0 = vadd.f32 %v2299_v30, %v979_v63  ;;  %v987_v24 = vand.u32 2147483648, %v2243_v61  ;;  %v1007_v50 = vmul.f32 %v1273_v10, %v2290_v22 }
 0x196   : > { %1274 = vrcp.f32 %v2358_v51  ;;  %vm2371_vm9 = vcmp.eq.f32.partialorder %v1000_v45, 8.507059e+37  ;;  %v1096_v16 = vsel %vm1095_vm2, %v1076_v54, %v2232_v33  ;;  %v1078_v15 = vperm.slane %v899_v12, %v2014_v19 }
 0x197   : > { %vm1099_vm11 = vcmask 1043459   ;;  %vm981_vm13 = vweird.f32 %v2243_v61  ;;  %v985_v53 = vand.u32 2147483647, %v2243_v61  ;;  %v974_v45 = vsel %vm2303_vm8, %v2281_v6, %v969_v1 }
 0x198   : > { %v929_v33 = vsel %vm2347_vm3, %v928_v20, %v924_v23  ;;  %vm1041_vm2 = vweird.f32 %v2226_v25  ;;  %vm2396_vm6 = vmor %vm981_vm13, %vm982_vm7  ;;  %v1008_v26 = vsub.f32 1.0, %v1007_v50  ;;  %v954_v61 = vsel %vm2381_vm10, %v2221_v7, %v950_v34 }
 0x199   : > { %v1039_v31 = vmul.f32 %v2292_v29, %v1038_v58  ;;  %v984_v6 = vsel %vm2396_vm6, %v2299_v30, %v980_v0  ;;  %v1017_v62 = vand.u32 2147483648, %v2290_v22  ;;  %vm1101_vm8 = vcmask 1044484  }
 0x19a   : > { %v988_v44 = vor.u32 1.1754944e-38, %v987_v24  ;;  %v1009_v14 = vmul.f32 %v1273_v10, %v1008_v26  ;;  %vm1012_vm12 = vweird.f32 %v1273_v10  ;;  %v1015_v60 = vand.u32 2147483647, %v2290_v22 }
 0x19b   : > { %v1079_v7 = vsel %vm1072_vm4, %v1078_v15, %v1077_v5  ;;  %v1081_v3 = vperm.slane %v929_v33, %v2014_v19  ;;  %v1045_v40 = vand.u32 2147483647, %v2226_v25  ;;  %vm986_vm1 = vcmp.eq.f32.partialorder %v985_v53, 8.507059e+37 }
 0x19c   : > { %v1275_v30 = vpop.eup %1274  ;;  %v959_v43 = vsel %vm2343_vm14, %v958_v57, %v954_v61  ;;  %v989_v8 = vsel %vm986_vm1, %v988_v44, %v984_v6  ;;  %v1010_v48 = vadd.f32 %v1273_v10, %v1009_v14  ;;  %vm1011_vm3 = vweird.f32 %v2290_v22 }
 0x19d   : > { %v1040_v17 = vadd.f32 %v2292_v29, %v1039_v31  ;;  %vm1042_vm5 = vweird.f32 %v2292_v29  ;;  %vm1013_vm7 = vmor %vm1011_vm3, %vm1012_vm12  ;;  %v1018_v49 = vor.u32 1.1754944e-38, %v1017_v62  ;;  %v1022_v5 = vmul.f32 %v1275_v30, %v2358_v51 }
 0x19e   : > { %v1098_v35 = vsel %vm1097_vm15, %v1079_v7, %v1096_v16  ;;  %v1047_v32 = vand.u32 2147483648, %v2226_v25  ;;  %v1014_v57 = vsel %vm1013_vm7, %v1273_v10, %v1010_v48  ;;  %vm1016_vm14 = vcmp.eq.f32.partialorder %v1015_v60, 8.507059e+37  ;;  %vm2443_vm15 = vmor %vm1041_vm2, %vm1042_vm5 }
 0x19f   : > { %v1082_v22 = vsel %vm1072_vm4, %v1081_v3, %v1080_v4  ;;  %v1087_v21 = vperm.slane %v989_v8, %v2014_v19  ;;  %v1019_v28 = vsel %vm1016_vm14, %v1018_v49, %v1014_v57  ;;  %v1023_v9 = vsub.f32 1.0, %v1022_v5 }
 0x1a0   : > { %v1004_v41 = vsel %vm2371_vm9, %v2217_v11, %v999_v37  ;;  %v1086_v38 = vperm.slane %v974_v45, %v2003_v47  ;;  %v1084_v54 = vperm.slane %v959_v43, %v2014_v19  ;;  %v1032_v4 = vand.u32 2147483648, %v2358_v51 }
 0x1a1   : > { %v1044_v52 = vsel %vm2443_vm15, %v2292_v29, %v1040_v17  ;;  %v1024_v11 = vmul.f32 %v1275_v30, %v1023_v9  ;;  %vm1027_vm0 = vweird.f32 %v1275_v30  ;;  %v1030_v36 = vand.u32 2147483647, %v2358_v51 }
 0x1a2   : > { %v1100_v25 = vsel %vm1099_vm11, %v1082_v22, %v1098_v35  ;;  %v1048_v27 = vor.u32 1.1754944e-38, %v1047_v32  ;;  %vm1103_vm9 = vcmask 1045509   ;;  %v1090_v37 = vperm.slane %v1019_v28, %v2014_v19 }
 0x1a3   : > { %vm1046_vm10 = vcmp.eq.f32.partialorder %v1045_v40, 8.507059e+37  ;;  %v1088_v1 = vsel %vm1072_vm4, %v1087_v21, %v1086_v38  ;;  %v1025_v59 = vadd.f32 %v1275_v30, %v1024_v11  ;;  %vm1026_vm13 = vweird.f32 %v2358_v51 }
 0x1a4   : > { %v1089_v29 = vperm.slane %v1004_v41, %v2003_v47  ;;  %v1085_v46 = vsel %vm1072_vm4, %v1084_v54, %v1083_v56  ;;  %v1049_v12 = vsel %vm1046_vm10, %v1048_v27, %v1044_v52  ;;  %vm1028_vm2 = vmor %vm1026_vm13, %vm1027_vm0  ;;  %v1033_v18 = vor.u32 1.1754944e-38, %v1032_v4 }
 0x1a5   : > { %v1102_v20 = vsel %vm1101_vm8, %v1085_v46, %v1100_v25  ;;  %v1029_v63 = vsel %vm1028_vm2, %v1275_v30, %v1025_v59  ;;  %vm1031_vm11 = vcmp.eq.f32.partialorder %v1030_v36, 8.507059e+37  ;;  %vm1105_vm6 = vcmask 1046534  }
 0x1a6   : > { %v1104_v10 = vsel %vm1103_vm9, %v1088_v1, %v1102_v20  ;;  %v1091_v34 = vsel %vm1072_vm4, %v1090_v37, %v1089_v29  ;;  %v1034_v51 = vsel %vm1031_vm11, %v1033_v18, %v1029_v63  ;;  %v1093_v23 = vperm.slane %v1049_v12, %v2014_v19 }
 0x1a7   : > { %vm1107_vm12 = vcmask 1047559   ;;  %v1092_v39 = vperm.slane %v1034_v51, %v2003_v47  ;;  %vm1110_vm1 = vcmask 130048   ;;  %v1106_v56 = vsel %vm1105_vm6, %v1091_v34, %v1104_v10 }
 0x1a9   : > { %v1094_v58 = vsel %vm1072_vm4, %v1093_v23, %v1092_v39 }
 0x1aa   : > { %v1108_v0 = vsel %vm1107_vm12, %v1094_v58, %v1106_v56 }
 0x1ab   : > { %1111 = vst.msk [vmem:[%s225_s13] sm:$0xff] %vm1110_vm1, %v1108_v0 }
 0x1ac PF: > { %s16_s20 = sadd.s32 1, %s1282_s20  }
 0x1ad   : > { %p13_p5 = scmp.ge.s32.totalorder %s16_s20, 4  }
 0x1af   :  { %15 = sbr.rel (!%p13_p5) target bundleno = 2 (0x2), region = 70 }

</bundles_post_ra>
